<compile_context>
chip_gen: v5e
topology: v5e:2x2
jax: 0.10.0
libtpu: 0.0.40
codegen_flags: <defaults>
</compile_context>

<pallas_src>
import functools

import jax
import jax.numpy as jnp
from jax import lax
from jax.experimental import pallas as pl
from jax.experimental.pallas import tpu as pltpu

BN_EPS = 1e-5
CIN = 3            # InitialBlock in_channels
COUT = 13          # conv out_channels
CALL = COUT + CIN  # 16 channels after concat (PReLU width)


# --------------------------------------------------------------------------
# Kernels
# --------------------------------------------------------------------------
def _conv_row(tap_refs, w_ref, ii, wo, with_pool):
    """Conv (and optionally the 2x2 maxpool) for one output row of the tile.

    tap_refs[kh][cp] block shape: (1, TH, CIN, Wo+1), holding
      xp[n, c, 2*(row)+kh, 2*w + cp]  for the tile's rows.
    Returns conv (COUT, Wo) with NO bias (cancelled by BN), and pool (CIN, Wo).
    """
    conv = jnp.zeros((COUT, wo), jnp.float32)
    pool = None
    for kh in range(3):
        for kw in range(3):
            cp = kw & 1                 # column parity of this tap
            dc = 1 if kw == 2 else 0    # +1 column offset for kw == 2
            tap = tap_refs[kh][cp][0, ii, :, dc:dc + wo]        # (CIN, Wo)
            # 9 accumulated small matmuls instead of an im2col concat.
            conv = conv + jnp.dot(w_ref[kh * 3 + kw], tap,
                                  preferred_element_type=jnp.float32)
            if with_pool and kh >= 1 and kw >= 1:
                # MaxPool2d(2,2) window == taps (1,1),(1,2),(2,1),(2,2).
                pool = tap if pool is None else jnp.maximum(pool, tap)
    return conv, pool


def _stats_kernel(t00, t01, t10, t11, t20, t21, w_ref, stat_ref, *, th, wo):
    """Pass 1: per-tile per-channel sum and sum-of-squares of the conv."""
    taps = ((t00, t01), (t10, t11), (t20, t21))
    s = jnp.zeros((COUT, wo), jnp.float32)
    q = jnp.zeros((COUT, wo), jnp.float32)
    for ii in range(th):
        conv, _ = _conv_row(taps, w_ref, ii, wo, with_pool=False)
        s = s + conv
        q = q + conv * conv
    stat_ref[0, 0, :, 0:1] = jnp.sum(s, axis=1, keepdims=True)   # (COUT, 1)
    stat_ref[0, 0, :, 1:2] = jnp.sum(q, axis=1, keepdims=True)


def _apply_kernel(t00, t01, t10, t11, t20, t21, w_ref, scale_ref, shift_ref,
                  alpha_ref, out_ref, *, th, wo):
    """Pass 2: conv + folded BN + maxpool + concat + PReLU, fused."""
    taps = ((t00, t01), (t10, t11), (t20, t21))
    scale = scale_ref[...]                 # (COUT, 1) = gamma * rsqrt(var+eps)
    shift = shift_ref[...]                 # (COUT, 1) = beta - mean * scale
    a_main = alpha_ref[0:COUT, :]          # (COUT, 1)
    a_side = alpha_ref[COUT:CALL, :]       # (CIN, 1)
    for ii in range(th):
        conv, pool = _conv_row(taps, w_ref, ii, wo, with_pool=True)
        main = conv * scale + shift                          # folded BN affine
        main = jnp.where(main > 0, main, a_main * main)      # PReLU (main)
        side = jnp.where(pool > 0, pool, a_side * pool)      # PReLU (side)
        # Lane-dense stores into the (16, Wo) output tile of this row.
        out_ref[0, ii, 0:COUT, :] = main
        out_ref[0, ii, COUT:CALL, :] = side


# --------------------------------------------------------------------------
# Wrapper
# --------------------------------------------------------------------------
def _pick_row_tile(ho, target=8):
    for t in range(min(ho, target), 0, -1):
        if ho % t == 0:
            return t
    return 1


def initial_block(x_nchw, conv_w, conv_b, bn_gamma, bn_beta, prelu_alpha):
    """Forward of ENet InitialBlock (training-mode BatchNorm).

    x_nchw: (N, 3, H, W) float32, H and W even.
    Returns (N, 16, H//2, W//2) float32 (main 13 conv channels + 3 pooled).
    """
    # Conv bias is exactly cancelled by the training-mode BN mean subtraction.
    del conv_b
    N, cin, H, W = x_nchw.shape
    assert cin == CIN and H % 2 == 0 and W % 2 == 0
    Ho, Wo = H // 2, W // 2
    TH = _pick_row_tile(Ho)          # output rows per grid step
    n_t = Ho // TH

    x = x_nchw.astype(jnp.float32)
    xp = jnp.pad(x, ((0, 0), (0, 0), (1, 1), (1, 1)))        # (N,CIN,H+2,W+2)

    # 6 stride-2 tap-source arrays, laid out (N, Ho, CIN, Wo+1):
    #   taps[kh][cp][n, i, c, w] = xp[n, c, 2*i + kh, 2*w + cp]
    def tap_src(kh, cp):
        a = xp[:, :, kh:kh + 2 * Ho:2, cp::2]                # (N,CIN,Ho,Wo+1)
        return jnp.transpose(a, (0, 2, 1, 3))                # (N,Ho,CIN,Wo+1)

    taps = [tap_src(kh, cp) for kh in range(3) for cp in range(2)]

    # Per-tap weight matrices, k = kh*3 + kw : (9, COUT, CIN)
    w_taps = jnp.transpose(conv_w.astype(jnp.float32),
                           (2, 3, 0, 1)).reshape(9, COUT, CIN)

    tap_spec = pl.BlockSpec((1, TH, CIN, Wo + 1), lambda n, t: (n, t, 0, 0))
    w_spec = pl.BlockSpec((9, COUT, CIN), lambda n, t: (0, 0, 0))

    def vec_spec(rows):
        return pl.BlockSpec((rows, 1), lambda n, t: (0, 0))

    cparams = pltpu.CompilerParams(
        dimension_semantics=("parallel", "parallel"),
        vmem_limit_bytes=32 * 1024 * 1024)

    # ---- pass 1: per-tile conv channel sums / sums-of-squares -------------
    stats = pl.pallas_call(
        functools.partial(_stats_kernel, th=TH, wo=Wo),
        out_shape=jax.ShapeDtypeStruct((N, n_t, COUT, 2), jnp.float32),
        grid=(N, n_t),
        in_specs=[tap_spec] * 6 + [w_spec],
        out_specs=pl.BlockSpec((1, 1, COUT, 2), lambda n, t: (n, t, 0, 0)),
        compiler_params=cparams,
    )(*taps, w_taps)

    # Fold batch statistics + BN affine into one per-channel scale/shift.
    m = float(N * Ho * Wo)
    ssum = jnp.sum(stats[..., 0], axis=(0, 1))                # (COUT,)
    ssq = jnp.sum(stats[..., 1], axis=(0, 1))
    mean = ssum / m
    var = ssq / m - mean * mean                               # biased variance
    scale = bn_gamma.astype(jnp.float32) * lax.rsqrt(var + BN_EPS)
    shift = bn_beta.astype(jnp.float32) - mean * scale
    scale = scale.reshape(COUT, 1)
    shift = shift.reshape(COUT, 1)
    alpha = prelu_alpha.astype(jnp.float32).reshape(CALL, 1)

    # ---- pass 2: conv + BN + maxpool + concat + PReLU, fused ---------------
    out = pl.pallas_call(
        functools.partial(_apply_kernel, th=TH, wo=Wo),
        out_shape=jax.ShapeDtypeStruct((N, Ho, CALL, Wo), jnp.float32),
        grid=(N, n_t),
        in_specs=[tap_spec] * 6 + [w_spec, vec_spec(COUT), vec_spec(COUT),
                                   vec_spec(CALL)],
        out_specs=pl.BlockSpec((1, TH, CALL, Wo), lambda n, t: (n, t, 0, 0)),
        compiler_params=cparams,
    )(*taps, w_taps, scale, shift, alpha)

    # (N, Ho, 16, Wo) -> NCHW
    return jnp.transpose(out, (0, 2, 1, 3))


# --------------------------------------------------------------------------
# Pure-JAX reference (mirrors the torch forward, including the conv bias)
# --------------------------------------------------------------------------
def initial_block_ref(x, conv_w, conv_b, bn_gamma, bn_beta, prelu_alpha):
    main = lax.conv_general_dilated(
        x, conv_w, window_strides=(2, 2), padding=((1, 1), (1, 1)),
        dimension_numbers=("NCHW", "OIHW", "NCHW"))
    main = main + conv_b[None, :, None, None]
    mean = jnp.mean(main, axis=(0, 2, 3), keepdims=True)
    var = jnp.mean((main - mean) ** 2, axis=(0, 2, 3), keepdims=True)
    main = (main - mean) / jnp.sqrt(var + BN_EPS)
    main = main * bn_gamma[None, :, None, None] + bn_beta[None, :, None, None]
    side = lax.reduce_window(x, -jnp.inf, lax.max,
                             (1, 1, 2, 2), (1, 1, 2, 2), "VALID")
    y = jnp.concatenate([main, side], axis=1)
    a = prelu_alpha[None, :, None, None]
    return jnp.where(y > 0, y, a * y)


if __name__ == "__main__":
    key = jax.random.PRNGKey(0)
    kx, kw, kb, kg, kbe = jax.random.split(key, 5)

    N, H, W = 2, 16, 16
    x = jax.random.normal(kx, (N, CIN, H, W), dtype=jnp.float32)

    # Deterministic synthetic parameters (module __init__ shapes).
    conv_w = 0.1 * jax.random.normal(kw, (COUT, CIN, 3, 3), dtype=jnp.float32)
    conv_b = 0.1 * jax.random.normal(kb, (COUT,), dtype=jnp.float32)
    bn_gamma = 1.0 + 0.1 * jax.random.normal(kg, (COUT,), dtype=jnp.float32)
    bn_beta = 0.1 * jax.random.normal(kbe, (COUT,), dtype=jnp.float32)
    prelu_alpha = jnp.full((CALL,), 0.25, dtype=jnp.float32)  # torch default

    # TODO(synk): BatchNorm running_mean/running_var buffer updates (a
    # training-time side effect) are not modeled; they do not affect the
    # forward output in training mode.

    out = initial_block(x, conv_w, conv_b, bn_gamma, bn_beta, prelu_alpha)
    out = jax.block_until_ready(out)

    ref = initial_block_ref(x, conv_w, conv_b, bn_gamma, bn_beta, prelu_alpha)
    assert out.shape == (N, CALL, H // 2, W // 2), out.shape
    err = float(jnp.max(jnp.abs(out - ref)))
    assert jnp.allclose(out, ref, rtol=1e-4, atol=1e-4), err
    print("KERNEL_OK")
</pallas_src>

<mosaic_0001>
module attributes {stable_mosaic.version = 11 : i64} {
  func.func @_stats_kernel(%arg0: i32, %arg1: i32, %arg2: memref<1x8x3x9xf32, #tpu.memory_space<vmem>>, %arg3: memref<1x8x3x9xf32, #tpu.memory_space<vmem>>, %arg4: memref<1x8x3x9xf32, #tpu.memory_space<vmem>>, %arg5: memref<1x8x3x9xf32, #tpu.memory_space<vmem>>, %arg6: memref<1x8x3x9xf32, #tpu.memory_space<vmem>>, %arg7: memref<1x8x3x9xf32, #tpu.memory_space<vmem>>, %arg8: memref<9x13x3xf32, #tpu.memory_space<vmem>>, %arg9: memref<1x1x13x2xf32, #tpu.memory_space<vmem>>) attributes {dimension_semantics = [#tpu.dimension_semantics<parallel>, #tpu.dimension_semantics<parallel>], iteration_bounds = array<i64: 2, 1>, scalar_prefetch = 0 : i64, scratch_operands = 0 : i64, tpu.core_type = #tpu.core_type<tc>, window_params = [{transform_indices = @transform_0, window_bounds = array<i64: 1, 8, 3, 9>}, {transform_indices = @transform_1, window_bounds = array<i64: 1, 8, 3, 9>}, {transform_indices = @transform_2, window_bounds = array<i64: 1, 8, 3, 9>}, {transform_indices = @transform_3, window_bounds = array<i64: 1, 8, 3, 9>}, {transform_indices = @transform_4, window_bounds = array<i64: 1, 8, 3, 9>}, {transform_indices = @transform_5, window_bounds = array<i64: 1, 8, 3, 9>}, {pipeline_mode = #tpu.pipeline_mode<synchronous>, transform_indices = @transform_6, window_bounds = array<i64: 9, 13, 3>}, {transform_indices = @transform_7, window_bounds = array<i64: 1, 1, 13, 2>}]} {
    %cst = arith.constant 0.000000e+00 : f32
    %0 = vector.broadcast %cst : f32 to vector<13x8xf32>
    %cst_0 = arith.constant 0.000000e+00 : f32
    %1 = vector.broadcast %cst_0 : f32 to vector<13x8xf32>
    %cst_1 = arith.constant 0.000000e+00 : f32
    %2 = vector.broadcast %cst_1 : f32 to vector<13x8xf32>
    %c0 = arith.constant 0 : index
    %c0_2 = arith.constant 0 : index
    %c0_3 = arith.constant 0 : index
    %c0_4 = arith.constant 0 : index
    %3 = vector.load %arg2[%c0, %c0_2, %c0_3, %c0_4] : memref<1x8x3x9xf32, #tpu.memory_space<vmem>>, vector<1x1x3x8xf32>
    %4 = vector.shape_cast %3 : vector<1x1x3x8xf32> to vector<3x8xf32>
    %c0_5 = arith.constant 0 : index
    %c0_6 = arith.constant 0 : index
    %c0_7 = arith.constant 0 : index
    %5 = vector.load %arg8[%c0_5, %c0_6, %c0_7] : memref<9x13x3xf32, #tpu.memory_space<vmem>>, vector<1x13x3xf32>
    %6 = vector.shape_cast %5 : vector<1x13x3xf32> to vector<13x3xf32>
    %cst_8 = arith.constant dense<0.000000e+00> : vector<13x8xf32>
    %7 = tpu.matmul %6, %4, %cst_8 {dimension_numbers = #tpu.dot_dimension_numbers<[1], [0], [0], [1], [0, 0, 1, 1], [], []>} : vector<13x3xf32>, vector<3x8xf32>, vector<13x8xf32> -> vector<13x8xf32>
    %8 = arith.addf %2, %7 : vector<13x8xf32>
    %c0_9 = arith.constant 0 : index
    %c0_10 = arith.constant 0 : index
    %c0_11 = arith.constant 0 : index
    %c0_12 = arith.constant 0 : index
    %9 = vector.load %arg3[%c0_9, %c0_10, %c0_11, %c0_12] : memref<1x8x3x9xf32, #tpu.memory_space<vmem>>, vector<1x1x3x8xf32>
    %10 = vector.shape_cast %9 : vector<1x1x3x8xf32> to vector<3x8xf32>
    %c1 = arith.constant 1 : index
    %c0_13 = arith.constant 0 : index
    %c0_14 = arith.constant 0 : index
    %11 = vector.load %arg8[%c1, %c0_13, %c0_14] : memref<9x13x3xf32, #tpu.memory_space<vmem>>, vector<1x13x3xf32>
    %12 = vector.shape_cast %11 : vector<1x13x3xf32> to vector<13x3xf32>
    %cst_15 = arith.constant dense<0.000000e+00> : vector<13x8xf32>
    %13 = tpu.matmul %12, %10, %cst_15 {dimension_numbers = #tpu.dot_dimension_numbers<[1], [0], [0], [1], [0, 0, 1, 1], [], []>} : vector<13x3xf32>, vector<3x8xf32>, vector<13x8xf32> -> vector<13x8xf32>
    %14 = arith.addf %8, %13 : vector<13x8xf32>
    %c0_16 = arith.constant 0 : index
    %c0_17 = arith.constant 0 : index
    %c0_18 = arith.constant 0 : index
    %c1_19 = arith.constant 1 : index
    %15 = vector.load %arg2[%c0_16, %c0_17, %c0_18, %c1_19] : memref<1x8x3x9xf32, #tpu.memory_space<vmem>>, vector<1x1x3x8xf32>
    %16 = vector.shape_cast %15 : vector<1x1x3x8xf32> to vector<3x8xf32>
    %c2 = arith.constant 2 : index
    %c0_20 = arith.constant 0 : index
    %c0_21 = arith.constant 0 : index
    %17 = vector.load %arg8[%c2, %c0_20, %c0_21] : memref<9x13x3xf32, #tpu.memory_space<vmem>>, vector<1x13x3xf32>
    %18 = vector.shape_cast %17 : vector<1x13x3xf32> to vector<13x3xf32>
    %cst_22 = arith.constant dense<0.000000e+00> : vector<13x8xf32>
    %19 = tpu.matmul %18, %16, %cst_22 {dimension_numbers = #tpu.dot_dimension_numbers<[1], [0], [0], [1], [0, 0, 1, 1], [], []>} : vector<13x3xf32>, vector<3x8xf32>, vector<13x8xf32> -> vector<13x8xf32>
    %20 = arith.addf %14, %19 : vector<13x8xf32>
    %c0_23 = arith.constant 0 : index
    %c0_24 = arith.constant 0 : index
    %c0_25 = arith.constant 0 : index
    %c0_26 = arith.constant 0 : index
    %21 = vector.load %arg4[%c0_23, %c0_24, %c0_25, %c0_26] : memref<1x8x3x9xf32, #tpu.memory_space<vmem>>, vector<1x1x3x8xf32>
    %22 = vector.shape_cast %21 : vector<1x1x3x8xf32> to vector<3x8xf32>
    %c3 = arith.constant 3 : index
    %c0_27 = arith.constant 0 : index
    %c0_28 = arith.constant 0 : index
    %23 = vector.load %arg8[%c3, %c0_27, %c0_28] : memref<9x13x3xf32, #tpu.memory_space<vmem>>, vector<1x13x3xf32>
    %24 = vector.shape_cast %23 : vector<1x13x3xf32> to vector<13x3xf32>
    %cst_29 = arith.constant dense<0.000000e+00> : vector<13x8xf32>
    %25 = tpu.matmul %24, %22, %cst_29 {dimension_numbers = #tpu.dot_dimension_numbers<[1], [0], [0], [1], [0, 0, 1, 1], [], []>} : vector<13x3xf32>, vector<3x8xf32>, vector<13x8xf32> -> vector<13x8xf32>
    %26 = arith.addf %20, %25 : vector<13x8xf32>
    %c0_30 = arith.constant 0 : index
    %c0_31 = arith.constant 0 : index
    %c0_32 = arith.constant 0 : index
    %c0_33 = arith.constant 0 : index
    %27 = vector.load %arg5[%c0_30, %c0_31, %c0_32, %c0_33] : memref<1x8x3x9xf32, #tpu.memory_space<vmem>>, vector<1x1x3x8xf32>
    %28 = vector.shape_cast %27 : vector<1x1x3x8xf32> to vector<3x8xf32>
    %c4 = arith.constant 4 : index
    %c0_34 = arith.constant 0 : index
    %c0_35 = arith.constant 0 : index
    %29 = vector.load %arg8[%c4, %c0_34, %c0_35] : memref<9x13x3xf32, #tpu.memory_space<vmem>>, vector<1x13x3xf32>
    %30 = vector.shape_cast %29 : vector<1x13x3xf32> to vector<13x3xf32>
    %cst_36 = arith.constant dense<0.000000e+00> : vector<13x8xf32>
    %31 = tpu.matmul %30, %28, %cst_36 {dimension_numbers = #tpu.dot_dimension_numbers<[1], [0], [0], [1], [0, 0, 1, 1], [], []>} : vector<13x3xf32>, vector<3x8xf32>, vector<13x8xf32> -> vector<13x8xf32>
    %32 = arith.addf %26, %31 : vector<13x8xf32>
    %c0_37 = arith.constant 0 : index
    %c0_38 = arith.constant 0 : index
    %c0_39 = arith.constant 0 : index
    %c1_40 = arith.constant 1 : index
    %33 = vector.load %arg4[%c0_37, %c0_38, %c0_39, %c1_40] : memref<1x8x3x9xf32, #tpu.memory_space<vmem>>, vector<1x1x3x8xf32>
    %34 = vector.shape_cast %33 : vector<1x1x3x8xf32> to vector<3x8xf32>
    %c5 = arith.constant 5 : index
    %c0_41 = arith.constant 0 : index
    %c0_42 = arith.constant 0 : index
    %35 = vector.load %arg8[%c5, %c0_41, %c0_42] : memref<9x13x3xf32, #tpu.memory_space<vmem>>, vector<1x13x3xf32>
    %36 = vector.shape_cast %35 : vector<1x13x3xf32> to vector<13x3xf32>
    %cst_43 = arith.constant dense<0.000000e+00> : vector<13x8xf32>
    %37 = tpu.matmul %36, %34, %cst_43 {dimension_numbers = #tpu.dot_dimension_numbers<[1], [0], [0], [1], [0, 0, 1, 1], [], []>} : vector<13x3xf32>, vector<3x8xf32>, vector<13x8xf32> -> vector<13x8xf32>
    %38 = arith.addf %32, %37 : vector<13x8xf32>
    %c0_44 = arith.constant 0 : index
    %c0_45 = arith.constant 0 : index
    %c0_46 = arith.constant 0 : index
    %c0_47 = arith.constant 0 : index
    %39 = vector.load %arg6[%c0_44, %c0_45, %c0_46, %c0_47] : memref<1x8x3x9xf32, #tpu.memory_space<vmem>>, vector<1x1x3x8xf32>
    %40 = vector.shape_cast %39 : vector<1x1x3x8xf32> to vector<3x8xf32>
    %c6 = arith.constant 6 : index
    %c0_48 = arith.constant 0 : index
    %c0_49 = arith.constant 0 : index
    %41 = vector.load %arg8[%c6, %c0_48, %c0_49] : memref<9x13x3xf32, #tpu.memory_space<vmem>>, vector<1x13x3xf32>
    %42 = vector.shape_cast %41 : vector<1x13x3xf32> to vector<13x3xf32>
    %cst_50 = arith.constant dense<0.000000e+00> : vector<13x8xf32>
    %43 = tpu.matmul %42, %40, %cst_50 {dimension_numbers = #tpu.dot_dimension_numbers<[1], [0], [0], [1], [0, 0, 1, 1], [], []>} : vector<13x3xf32>, vector<3x8xf32>, vector<13x8xf32> -> vector<13x8xf32>
    %44 = arith.addf %38, %43 : vector<13x8xf32>
    %c0_51 = arith.constant 0 : index
    %c0_52 = arith.constant 0 : index
    %c0_53 = arith.constant 0 : index
    %c0_54 = arith.constant 0 : index
    %45 = vector.load %arg7[%c0_51, %c0_52, %c0_53, %c0_54] : memref<1x8x3x9xf32, #tpu.memory_space<vmem>>, vector<1x1x3x8xf32>
    %46 = vector.shape_cast %45 : vector<1x1x3x8xf32> to vector<3x8xf32>
    %c7 = arith.constant 7 : index
    %c0_55 = arith.constant 0 : index
    %c0_56 = arith.constant 0 : index
    %47 = vector.load %arg8[%c7, %c0_55, %c0_56] : memref<9x13x3xf32, #tpu.memory_space<vmem>>, vector<1x13x3xf32>
    %48 = vector.shape_cast %47 : vector<1x13x3xf32> to vector<13x3xf32>
    %cst_57 = arith.constant dense<0.000000e+00> : vector<13x8xf32>
    %49 = tpu.matmul %48, %46, %cst_57 {dimension_numbers = #tpu.dot_dimension_numbers<[1], [0], [0], [1], [0, 0, 1, 1], [], []>} : vector<13x3xf32>, vector<3x8xf32>, vector<13x8xf32> -> vector<13x8xf32>
    %50 = arith.addf %44, %49 : vector<13x8xf32>
    %c0_58 = arith.constant 0 : index
    %c0_59 = arith.constant 0 : index
    %c0_60 = arith.constant 0 : index
    %c1_61 = arith.constant 1 : index
    %51 = vector.load %arg6[%c0_58, %c0_59, %c0_60, %c1_61] : memref<1x8x3x9xf32, #tpu.memory_space<vmem>>, vector<1x1x3x8xf32>
    %52 = vector.shape_cast %51 : vector<1x1x3x8xf32> to vector<3x8xf32>
    %c8 = arith.constant 8 : index
    %c0_62 = arith.constant 0 : index
    %c0_63 = arith.constant 0 : index
    %53 = vector.load %arg8[%c8, %c0_62, %c0_63] : memref<9x13x3xf32, #tpu.memory_space<vmem>>, vector<1x13x3xf32>
    %54 = vector.shape_cast %53 : vector<1x13x3xf32> to vector<13x3xf32>
    %cst_64 = arith.constant dense<0.000000e+00> : vector<13x8xf32>
    %55 = tpu.matmul %54, %52, %cst_64 {dimension_numbers = #tpu.dot_dimension_numbers<[1], [0], [0], [1], [0, 0, 1, 1], [], []>} : vector<13x3xf32>, vector<3x8xf32>, vector<13x8xf32> -> vector<13x8xf32>
    %56 = arith.addf %50, %55 : vector<13x8xf32>
    %57 = arith.addf %0, %56 : vector<13x8xf32>
    %58 = arith.mulf %56, %56 : vector<13x8xf32>
    %59 = arith.addf %1, %58 : vector<13x8xf32>
    %cst_65 = arith.constant 0.000000e+00 : f32
    %60 = vector.broadcast %cst_65 : f32 to vector<13x8xf32>
    %c0_66 = arith.constant 0 : index
    %c1_67 = arith.constant 1 : index
    %c0_68 = arith.constant 0 : index
    %c0_69 = arith.constant 0 : index
    %61 = vector.load %arg2[%c0_66, %c1_67, %c0_68, %c0_69] : memref<1x8x3x9xf32, #tpu.memory_space<vmem>>, vector<1x1x3x8xf32>
    %62 = vector.shape_cast %61 : vector<1x1x3x8xf32> to vector<3x8xf32>
    %c0_70 = arith.constant 0 : index
    %c0_71 = arith.constant 0 : index
    %c0_72 = arith.constant 0 : index
    %63 = vector.load %arg8[%c0_70, %c0_71, %c0_72] : memref<9x13x3xf32, #tpu.memory_space<vmem>>, vector<1x13x3xf32>
    %64 = vector.shape_cast %63 : vector<1x13x3xf32> to vector<13x3xf32>
    %cst_73 = arith.constant dense<0.000000e+00> : vector<13x8xf32>
    %65 = tpu.matmul %64, %62, %cst_73 {dimension_numbers = #tpu.dot_dimension_numbers<[1], [0], [0], [1], [0, 0, 1, 1], [], []>} : vector<13x3xf32>, vector<3x8xf32>, vector<13x8xf32> -> vector<13x8xf32>
    %66 = arith.addf %60, %65 : vector<13x8xf32>
    %c0_74 = arith.constant 0 : index
    %c1_75 = arith.constant 1 : index
    %c0_76 = arith.constant 0 : index
    %c0_77 = arith.constant 0 : index
    %67 = vector.load %arg3[%c0_74, %c1_75, %c0_76, %c0_77] : memref<1x8x3x9xf32, #tpu.memory_space<vmem>>, vector<1x1x3x8xf32>
    %68 = vector.shape_cast %67 : vector<1x1x3x8xf32> to vector<3x8xf32>
    %c1_78 = arith.constant 1 : index
    %c0_79 = arith.constant 0 : index
    %c0_80 = arith.constant 0 : index
    %69 = vector.load %arg8[%c1_78, %c0_79, %c0_80] : memref<9x13x3xf32, #tpu.memory_space<vmem>>, vector<1x13x3xf32>
    %70 = vector.shape_cast %69 : vector<1x13x3xf32> to vector<13x3xf32>
    %cst_81 = arith.constant dense<0.000000e+00> : vector<13x8xf32>
    %71 = tpu.matmul %70, %68, %cst_81 {dimension_numbers = #tpu.dot_dimension_numbers<[1], [0], [0], [1], [0, 0, 1, 1], [], []>} : vector<13x3xf32>, vector<3x8xf32>, vector<13x8xf32> -> vector<13x8xf32>
    %72 = arith.addf %66, %71 : vector<13x8xf32>
    %c0_82 = arith.constant 0 : index
    %c1_83 = arith.constant 1 : index
    %c0_84 = arith.constant 0 : index
    %c1_85 = arith.constant 1 : index
    %73 = vector.load %arg2[%c0_82, %c1_83, %c0_84, %c1_85] : memref<1x8x3x9xf32, #tpu.memory_space<vmem>>, vector<1x1x3x8xf32>
    %74 = vector.shape_cast %73 : vector<1x1x3x8xf32> to vector<3x8xf32>
    %c2_86 = arith.constant 2 : index
    %c0_87 = arith.constant 0 : index
    %c0_88 = arith.constant 0 : index
    %75 = vector.load %arg8[%c2_86, %c0_87, %c0_88] : memref<9x13x3xf32, #tpu.memory_space<vmem>>, vector<1x13x3xf32>
    %76 = vector.shape_cast %75 : vector<1x13x3xf32> to vector<13x3xf32>
    %cst_89 = arith.constant dense<0.000000e+00> : vector<13x8xf32>
    %77 = tpu.matmul %76, %74, %cst_89 {dimension_numbers = #tpu.dot_dimension_numbers<[1], [0], [0], [1], [0, 0, 1, 1], [], []>} : vector<13x3xf32>, vector<3x8xf32>, vector<13x8xf32> -> vector<13x8xf32>
    %78 = arith.addf %72, %77 : vector<13x8xf32>
    %c0_90 = arith.constant 0 : index
    %c1_91 = arith.constant 1 : index
    %c0_92 = arith.constant 0 : index
    %c0_93 = arith.constant 0 : index
    %79 = vector.load %arg4[%c0_90, %c1_91, %c0_92, %c0_93] : memref<1x8x3x9xf32, #tpu.memory_space<vmem>>, vector<1x1x3x8xf32>
    %80 = vector.shape_cast %79 : vector<1x1x3x8xf32> to vector<3x8xf32>
    %c3_94 = arith.constant 3 : index
    %c0_95 = arith.constant 0 : index
    %c0_96 = arith.constant 0 : index
    %81 = vector.load %arg8[%c3_94, %c0_95, %c0_96] : memref<9x13x3xf32, #tpu.memory_space<vmem>>, vector<1x13x3xf32>
    %82 = vector.shape_cast %81 : vector<1x13x3xf32> to vector<13x3xf32>
    %cst_97 = arith.constant dense<0.000000e+00> : vector<13x8xf32>
    %83 = tpu.matmul %82, %80, %cst_97 {dimension_numbers = #tpu.dot_dimension_numbers<[1], [0], [0], [1], [0, 0, 1, 1], [], []>} : vector<13x3xf32>, vector<3x8xf32>, vector<13x8xf32> -> vector<13x8xf32>
    %84 = arith.addf %78, %83 : vector<13x8xf32>
    %c0_98 = arith.constant 0 : index
    %c1_99 = arith.constant 1 : index
    %c0_100 = arith.constant 0 : index
    %c0_101 = arith.constant 0 : index
    %85 = vector.load %arg5[%c0_98, %c1_99, %c0_100, %c0_101] : memref<1x8x3x9xf32, #tpu.memory_space<vmem>>, vector<1x1x3x8xf32>
    %86 = vector.shape_cast %85 : vector<1x1x3x8xf32> to vector<3x8xf32>
    %c4_102 = arith.constant 4 : index
    %c0_103 = arith.constant 0 : index
    %c0_104 = arith.constant 0 : index
    %87 = vector.load %arg8[%c4_102, %c0_103, %c0_104] : memref<9x13x3xf32, #tpu.memory_space<vmem>>, vector<1x13x3xf32>
    %88 = vector.shape_cast %87 : vector<1x13x3xf32> to vector<13x3xf32>
    %cst_105 = arith.constant dense<0.000000e+00> : vector<13x8xf32>
    %89 = tpu.matmul %88, %86, %cst_105 {dimension_numbers = #tpu.dot_dimension_numbers<[1], [0], [0], [1], [0, 0, 1, 1], [], []>} : vector<13x3xf32>, vector<3x8xf32>, vector<13x8xf32> -> vector<13x8xf32>
    %90 = arith.addf %84, %89 : vector<13x8xf32>
    %c0_106 = arith.constant 0 : index
    %c1_107 = arith.constant 1 : index
    %c0_108 = arith.constant 0 : index
    %c1_109 = arith.constant 1 : index
    %91 = vector.load %arg4[%c0_106, %c1_107, %c0_108, %c1_109] : memref<1x8x3x9xf32, #tpu.memory_space<vmem>>, vector<1x1x3x8xf32>
    %92 = vector.shape_cast %91 : vector<1x1x3x8xf32> to vector<3x8xf32>
    %c5_110 = arith.constant 5 : index
    %c0_111 = arith.constant 0 : index
    %c0_112 = arith.constant 0 : index
    %93 = vector.load %arg8[%c5_110, %c0_111, %c0_112] : memref<9x13x3xf32, #tpu.memory_space<vmem>>, vector<1x13x3xf32>
    %94 = vector.shape_cast %93 : vector<1x13x3xf32> to vector<13x3xf32>
    %cst_113 = arith.constant dense<0.000000e+00> : vector<13x8xf32>
    %95 = tpu.matmul %94, %92, %cst_113 {dimension_numbers = #tpu.dot_dimension_numbers<[1], [0], [0], [1], [0, 0, 1, 1], [], []>} : vector<13x3xf32>, vector<3x8xf32>, vector<13x8xf32> -> vector<13x8xf32>
    %96 = arith.addf %90, %95 : vector<13x8xf32>
    %c0_114 = arith.constant 0 : index
    %c1_115 = arith.constant 1 : index
    %c0_116 = arith.constant 0 : index
    %c0_117 = arith.constant 0 : index
    %97 = vector.load %arg6[%c0_114, %c1_115, %c0_116, %c0_117] : memref<1x8x3x9xf32, #tpu.memory_space<vmem>>, vector<1x1x3x8xf32>
    %98 = vector.shape_cast %97 : vector<1x1x3x8xf32> to vector<3x8xf32>
    %c6_118 = arith.constant 6 : index
    %c0_119 = arith.constant 0 : index
    %c0_120 = arith.constant 0 : index
    %99 = vector.load %arg8[%c6_118, %c0_119, %c0_120] : memref<9x13x3xf32, #tpu.memory_space<vmem>>, vector<1x13x3xf32>
    %100 = vector.shape_cast %99 : vector<1x13x3xf32> to vector<13x3xf32>
    %cst_121 = arith.constant dense<0.000000e+00> : vector<13x8xf32>
    %101 = tpu.matmul %100, %98, %cst_121 {dimension_numbers = #tpu.dot_dimension_numbers<[1], [0], [0], [1], [0, 0, 1, 1], [], []>} : vector<13x3xf32>, vector<3x8xf32>, vector<13x8xf32> -> vector<13x8xf32>
    %102 = arith.addf %96, %101 : vector<13x8xf32>
    %c0_122 = arith.constant 0 : index
    %c1_123 = arith.constant 1 : index
    %c0_124 = arith.constant 0 : index
    %c0_125 = arith.constant 0 : index
    %103 = vector.load %arg7[%c0_122, %c1_123, %c0_124, %c0_125] : memref<1x8x3x9xf32, #tpu.memory_space<vmem>>, vector<1x1x3x8xf32>
    %104 = vector.shape_cast %103 : vector<1x1x3x8xf32> to vector<3x8xf32>
    %c7_126 = arith.constant 7 : index
    %c0_127 = arith.constant 0 : index
    %c0_128 = arith.constant 0 : index
    %105 = vector.load %arg8[%c7_126, %c0_127, %c0_128] : memref<9x13x3xf32, #tpu.memory_space<vmem>>, vector<1x13x3xf32>
    %106 = vector.shape_cast %105 : vector<1x13x3xf32> to vector<13x3xf32>
    %cst_129 = arith.constant dense<0.000000e+00> : vector<13x8xf32>
    %107 = tpu.matmul %106, %104, %cst_129 {dimension_numbers = #tpu.dot_dimension_numbers<[1], [0], [0], [1], [0, 0, 1, 1], [], []>} : vector<13x3xf32>, vector<3x8xf32>, vector<13x8xf32> -> vector<13x8xf32>
    %108 = arith.addf %102, %107 : vector<13x8xf32>
    %c0_130 = arith.constant 0 : index
    %c1_131 = arith.constant 1 : index
    %c0_132 = arith.constant 0 : index
    %c1_133 = arith.constant 1 : index
    %109 = vector.load %arg6[%c0_130, %c1_131, %c0_132, %c1_133] : memref<1x8x3x9xf32, #tpu.memory_space<vmem>>, vector<1x1x3x8xf32>
    %110 = vector.shape_cast %109 : vector<1x1x3x8xf32> to vector<3x8xf32>
    %c8_134 = arith.constant 8 : index
    %c0_135 = arith.constant 0 : index
    %c0_136 = arith.constant 0 : index
    %111 = vector.load %arg8[%c8_134, %c0_135, %c0_136] : memref<9x13x3xf32, #tpu.memory_space<vmem>>, vector<1x13x3xf32>
    %112 = vector.shape_cast %111 : vector<1x13x3xf32> to vector<13x3xf32>
    %cst_137 = arith.constant dense<0.000000e+00> : vector<13x8xf32>
    %113 = tpu.matmul %112, %110, %cst_137 {dimension_numbers = #tpu.dot_dimension_numbers<[1], [0], [0], [1], [0, 0, 1, 1], [], []>} : vector<13x3xf32>, vector<3x8xf32>, vector<13x8xf32> -> vector<13x8xf32>
    %114 = arith.addf %108, %113 : vector<13x8xf32>
    %115 = arith.addf %57, %114 : vector<13x8xf32>
    %116 = arith.mulf %114, %114 : vector<13x8xf32>
    %117 = arith.addf %59, %116 : vector<13x8xf32>
    %cst_138 = arith.constant 0.000000e+00 : f32
    %118 = vector.broadcast %cst_138 : f32 to vector<13x8xf32>
    %c0_139 = arith.constant 0 : index
    %c2_140 = arith.constant 2 : index
    %c0_141 = arith.constant 0 : index
    %c0_142 = arith.constant 0 : index
    %119 = vector.load %arg2[%c0_139, %c2_140, %c0_141, %c0_142] : memref<1x8x3x9xf32, #tpu.memory_space<vmem>>, vector<1x1x3x8xf32>
    %120 = vector.shape_cast %119 : vector<1x1x3x8xf32> to vector<3x8xf32>
    %c0_143 = arith.constant 0 : index
    %c0_144 = arith.constant 0 : index
    %c0_145 = arith.constant 0 : index
    %121 = vector.load %arg8[%c0_143, %c0_144, %c0_145] : memref<9x13x3xf32, #tpu.memory_space<vmem>>, vector<1x13x3xf32>
    %122 = vector.shape_cast %121 : vector<1x13x3xf32> to vector<13x3xf32>
    %cst_146 = arith.constant dense<0.000000e+00> : vector<13x8xf32>
    %123 = tpu.matmul %122, %120, %cst_146 {dimension_numbers = #tpu.dot_dimension_numbers<[1], [0], [0], [1], [0, 0, 1, 1], [], []>} : vector<13x3xf32>, vector<3x8xf32>, vector<13x8xf32> -> vector<13x8xf32>
    %124 = arith.addf %118, %123 : vector<13x8xf32>
    %c0_147 = arith.constant 0 : index
    %c2_148 = arith.constant 2 : index
    %c0_149 = arith.constant 0 : index
    %c0_150 = arith.constant 0 : index
    %125 = vector.load %arg3[%c0_147, %c2_148, %c0_149, %c0_150] : memref<1x8x3x9xf32, #tpu.memory_space<vmem>>, vector<1x1x3x8xf32>
    %126 = vector.shape_cast %125 : vector<1x1x3x8xf32> to vector<3x8xf32>
    %c1_151 = arith.constant 1 : index
    %c0_152 = arith.constant 0 : index
    %c0_153 = arith.constant 0 : index
    %127 = vector.load %arg8[%c1_151, %c0_152, %c0_153] : memref<9x13x3xf32, #tpu.memory_space<vmem>>, vector<1x13x3xf32>
    %128 = vector.shape_cast %127 : vector<1x13x3xf32> to vector<13x3xf32>
    %cst_154 = arith.constant dense<0.000000e+00> : vector<13x8xf32>
    %129 = tpu.matmul %128, %126, %cst_154 {dimension_numbers = #tpu.dot_dimension_numbers<[1], [0], [0], [1], [0, 0, 1, 1], [], []>} : vector<13x3xf32>, vector<3x8xf32>, vector<13x8xf32> -> vector<13x8xf32>
    %130 = arith.addf %124, %129 : vector<13x8xf32>
    %c0_155 = arith.constant 0 : index
    %c2_156 = arith.constant 2 : index
    %c0_157 = arith.constant 0 : index
    %c1_158 = arith.constant 1 : index
    %131 = vector.load %arg2[%c0_155, %c2_156, %c0_157, %c1_158] : memref<1x8x3x9xf32, #tpu.memory_space<vmem>>, vector<1x1x3x8xf32>
    %132 = vector.shape_cast %131 : vector<1x1x3x8xf32> to vector<3x8xf32>
    %c2_159 = arith.constant 2 : index
    %c0_160 = arith.constant 0 : index
    %c0_161 = arith.constant 0 : index
    %133 = vector.load %arg8[%c2_159, %c0_160, %c0_161] : memref<9x13x3xf32, #tpu.memory_space<vmem>>, vector<1x13x3xf32>
    %134 = vector.shape_cast %133 : vector<1x13x3xf32> to vector<13x3xf32>
    %cst_162 = arith.constant dense<0.000000e+00> : vector<13x8xf32>
    %135 = tpu.matmul %134, %132, %cst_162 {dimension_numbers = #tpu.dot_dimension_numbers<[1], [0], [0], [1], [0, 0, 1, 1], [], []>} : vector<13x3xf32>, vector<3x8xf32>, vector<13x8xf32> -> vector<13x8xf32>
    %136 = arith.addf %130, %135 : vector<13x8xf32>
    %c0_163 = arith.constant 0 : index
    %c2_164 = arith.constant 2 : index
    %c0_165 = arith.constant 0 : index
    %c0_166 = arith.constant 0 : index
    %137 = vector.load %arg4[%c0_163, %c2_164, %c0_165, %c0_166] : memref<1x8x3x9xf32, #tpu.memory_space<vmem>>, vector<1x1x3x8xf32>
    %138 = vector.shape_cast %137 : vector<1x1x3x8xf32> to vector<3x8xf32>
    %c3_167 = arith.constant 3 : index
    %c0_168 = arith.constant 0 : index
    %c0_169 = arith.constant 0 : index
    %139 = vector.load %arg8[%c3_167, %c0_168, %c0_169] : memref<9x13x3xf32, #tpu.memory_space<vmem>>, vector<1x13x3xf32>
    %140 = vector.shape_cast %139 : vector<1x13x3xf32> to vector<13x3xf32>
    %cst_170 = arith.constant dense<0.000000e+00> : vector<13x8xf32>
    %141 = tpu.matmul %140, %138, %cst_170 {dimension_numbers = #tpu.dot_dimension_numbers<[1], [0], [0], [1], [0, 0, 1, 1], [], []>} : vector<13x3xf32>, vector<3x8xf32>, vector<13x8xf32> -> vector<13x8xf32>
    %142 = arith.addf %136, %141 : vector<13x8xf32>
    %c0_171 = arith.constant 0 : index
    %c2_172 = arith.constant 2 : index
    %c0_173 = arith.constant 0 : index
    %c0_174 = arith.constant 0 : index
    %143 = vector.load %arg5[%c0_171, %c2_172, %c0_173, %c0_174] : memref<1x8x3x9xf32, #tpu.memory_space<vmem>>, vector<1x1x3x8xf32>
    %144 = vector.shape_cast %143 : vector<1x1x3x8xf32> to vector<3x8xf32>
    %c4_175 = arith.constant 4 : index
    %c0_176 = arith.constant 0 : index
    %c0_177 = arith.constant 0 : index
    %145 = vector.load %arg8[%c4_175, %c0_176, %c0_177] : memref<9x13x3xf32, #tpu.memory_space<vmem>>, vector<1x13x3xf32>
    %146 = vector.shape_cast %145 : vector<1x13x3xf32> to vector<13x3xf32>
    %cst_178 = arith.constant dense<0.000000e+00> : vector<13x8xf32>
    %147 = tpu.matmul %146, %144, %cst_178 {dimension_numbers = #tpu.dot_dimension_numbers<[1], [0], [0], [1], [0, 0, 1, 1], [], []>} : vector<13x3xf32>, vector<3x8xf32>, vector<13x8xf32> -> vector<13x8xf32>
    %148 = arith.addf %142, %147 : vector<13x8xf32>
    %c0_179 = arith.constant 0 : index
    %c2_180 = arith.constant 2 : index
    %c0_181 = arith.constant 0 : index
    %c1_182 = arith.constant 1 : index
    %149 = vector.load %arg4[%c0_179, %c2_180, %c0_181, %c1_182] : memref<1x8x3x9xf32, #tpu.memory_space<vmem>>, vector<1x1x3x8xf32>
    %150 = vector.shape_cast %149 : vector<1x1x3x8xf32> to vector<3x8xf32>
    %c5_183 = arith.constant 5 : index
    %c0_184 = arith.constant 0 : index
    %c0_185 = arith.constant 0 : index
    %151 = vector.load %arg8[%c5_183, %c0_184, %c0_185] : memref<9x13x3xf32, #tpu.memory_space<vmem>>, vector<1x13x3xf32>
    %152 = vector.shape_cast %151 : vector<1x13x3xf32> to vector<13x3xf32>
    %cst_186 = arith.constant dense<0.000000e+00> : vector<13x8xf32>
    %153 = tpu.matmul %152, %150, %cst_186 {dimension_numbers = #tpu.dot_dimension_numbers<[1], [0], [0], [1], [0, 0, 1, 1], [], []>} : vector<13x3xf32>, vector<3x8xf32>, vector<13x8xf32> -> vector<13x8xf32>
    %154 = arith.addf %148, %153 : vector<13x8xf32>
    %c0_187 = arith.constant 0 : index
    %c2_188 = arith.constant 2 : index
    %c0_189 = arith.constant 0 : index
    %c0_190 = arith.constant 0 : index
    %155 = vector.load %arg6[%c0_187, %c2_188, %c0_189, %c0_190] : memref<1x8x3x9xf32, #tpu.memory_space<vmem>>, vector<1x1x3x8xf32>
    %156 = vector.shape_cast %155 : vector<1x1x3x8xf32> to vector<3x8xf32>
    %c6_191 = arith.constant 6 : index
    %c0_192 = arith.constant 0 : index
    %c0_193 = arith.constant 0 : index
    %157 = vector.load %arg8[%c6_191, %c0_192, %c0_193] : memref<9x13x3xf32, #tpu.memory_space<vmem>>, vector<1x13x3xf32>
    %158 = vector.shape_cast %157 : vector<1x13x3xf32> to vector<13x3xf32>
    %cst_194 = arith.constant dense<0.000000e+00> : vector<13x8xf32>
    %159 = tpu.matmul %158, %156, %cst_194 {dimension_numbers = #tpu.dot_dimension_numbers<[1], [0], [0], [1], [0, 0, 1, 1], [], []>} : vector<13x3xf32>, vector<3x8xf32>, vector<13x8xf32> -> vector<13x8xf32>
    %160 = arith.addf %154, %159 : vector<13x8xf32>
    %c0_195 = arith.constant 0 : index
    %c2_196 = arith.constant 2 : index
    %c0_197 = arith.constant 0 : index
    %c0_198 = arith.constant 0 : index
    %161 = vector.load %arg7[%c0_195, %c2_196, %c0_197, %c0_198] : memref<1x8x3x9xf32, #tpu.memory_space<vmem>>, vector<1x1x3x8xf32>
    %162 = vector.shape_cast %161 : vector<1x1x3x8xf32> to vector<3x8xf32>
    %c7_199 = arith.constant 7 : index
    %c0_200 = arith.constant 0 : index
    %c0_201 = arith.constant 0 : index
    %163 = vector.load %arg8[%c7_199, %c0_200, %c0_201] : memref<9x13x3xf32, #tpu.memory_space<vmem>>, vector<1x13x3xf32>
    %164 = vector.shape_cast %163 : vector<1x13x3xf32> to vector<13x3xf32>
    %cst_202 = arith.constant dense<0.000000e+00> : vector<13x8xf32>
    %165 = tpu.matmul %164, %162, %cst_202 {dimension_numbers = #tpu.dot_dimension_numbers<[1], [0], [0], [1], [0, 0, 1, 1], [], []>} : vector<13x3xf32>, vector<3x8xf32>, vector<13x8xf32> -> vector<13x8xf32>
    %166 = arith.addf %160, %165 : vector<13x8xf32>
    %c0_203 = arith.constant 0 : index
    %c2_204 = arith.constant 2 : index
    %c0_205 = arith.constant 0 : index
    %c1_206 = arith.constant 1 : index
    %167 = vector.load %arg6[%c0_203, %c2_204, %c0_205, %c1_206] : memref<1x8x3x9xf32, #tpu.memory_space<vmem>>, vector<1x1x3x8xf32>
    %168 = vector.shape_cast %167 : vector<1x1x3x8xf32> to vector<3x8xf32>
    %c8_207 = arith.constant 8 : index
    %c0_208 = arith.constant 0 : index
    %c0_209 = arith.constant 0 : index
    %169 = vector.load %arg8[%c8_207, %c0_208, %c0_209] : memref<9x13x3xf32, #tpu.memory_space<vmem>>, vector<1x13x3xf32>
    %170 = vector.shape_cast %169 : vector<1x13x3xf32> to vector<13x3xf32>
    %cst_210 = arith.constant dense<0.000000e+00> : vector<13x8xf32>
    %171 = tpu.matmul %170, %168, %cst_210 {dimension_numbers = #tpu.dot_dimension_numbers<[1], [0], [0], [1], [0, 0, 1, 1], [], []>} : vector<13x3xf32>, vector<3x8xf32>, vector<13x8xf32> -> vector<13x8xf32>
    %172 = arith.addf %166, %171 : vector<13x8xf32>
    %173 = arith.addf %115, %172 : vector<13x8xf32>
    %174 = arith.mulf %172, %172 : vector<13x8xf32>
    %175 = arith.addf %117, %174 : vector<13x8xf32>
    %cst_211 = arith.constant 0.000000e+00 : f32
    %176 = vector.broadcast %cst_211 : f32 to vector<13x8xf32>
    %c0_212 = arith.constant 0 : index
    %c3_213 = arith.constant 3 : index
    %c0_214 = arith.constant 0 : index
    %c0_215 = arith.constant 0 : index
    %177 = vector.load %arg2[%c0_212, %c3_213, %c0_214, %c0_215] : memref<1x8x3x9xf32, #tpu.memory_space<vmem>>, vector<1x1x3x8xf32>
    %178 = vector.shape_cast %177 : vector<1x1x3x8xf32> to vector<3x8xf32>
    %c0_216 = arith.constant 0 : index
    %c0_217 = arith.constant 0 : index
    %c0_218 = arith.constant 0 : index
    %179 = vector.load %arg8[%c0_216, %c0_217, %c0_218] : memref<9x13x3xf32, #tpu.memory_space<vmem>>, vector<1x13x3xf32>
    %180 = vector.shape_cast %179 : vector<1x13x3xf32> to vector<13x3xf32>
    %cst_219 = arith.constant dense<0.000000e+00> : vector<13x8xf32>
    %181 = tpu.matmul %180, %178, %cst_219 {dimension_numbers = #tpu.dot_dimension_numbers<[1], [0], [0], [1], [0, 0, 1, 1], [], []>} : vector<13x3xf32>, vector<3x8xf32>, vector<13x8xf32> -> vector<13x8xf32>
    %182 = arith.addf %176, %181 : vector<13x8xf32>
    %c0_220 = arith.constant 0 : index
    %c3_221 = arith.constant 3 : index
    %c0_222 = arith.constant 0 : index
    %c0_223 = arith.constant 0 : index
    %183 = vector.load %arg3[%c0_220, %c3_221, %c0_222, %c0_223] : memref<1x8x3x9xf32, #tpu.memory_space<vmem>>, vector<1x1x3x8xf32>
    %184 = vector.shape_cast %183 : vector<1x1x3x8xf32> to vector<3x8xf32>
    %c1_224 = arith.constant 1 : index
    %c0_225 = arith.constant 0 : index
    %c0_226 = arith.constant 0 : index
    %185 = vector.load %arg8[%c1_224, %c0_225, %c0_226] : memref<9x13x3xf32, #tpu.memory_space<vmem>>, vector<1x13x3xf32>
    %186 = vector.shape_cast %185 : vector<1x13x3xf32> to vector<13x3xf32>
    %cst_227 = arith.constant dense<0.000000e+00> : vector<13x8xf32>
    %187 = tpu.matmul %186, %184, %cst_227 {dimension_numbers = #tpu.dot_dimension_numbers<[1], [0], [0], [1], [0, 0, 1, 1], [], []>} : vector<13x3xf32>, vector<3x8xf32>, vector<13x8xf32> -> vector<13x8xf32>
    %188 = arith.addf %182, %187 : vector<13x8xf32>
    %c0_228 = arith.constant 0 : index
    %c3_229 = arith.constant 3 : index
    %c0_230 = arith.constant 0 : index
    %c1_231 = arith.constant 1 : index
    %189 = vector.load %arg2[%c0_228, %c3_229, %c0_230, %c1_231] : memref<1x8x3x9xf32, #tpu.memory_space<vmem>>, vector<1x1x3x8xf32>
    %190 = vector.shape_cast %189 : vector<1x1x3x8xf32> to vector<3x8xf32>
    %c2_232 = arith.constant 2 : index
    %c0_233 = arith.constant 0 : index
    %c0_234 = arith.constant 0 : index
    %191 = vector.load %arg8[%c2_232, %c0_233, %c0_234] : memref<9x13x3xf32, #tpu.memory_space<vmem>>, vector<1x13x3xf32>
    %192 = vector.shape_cast %191 : vector<1x13x3xf32> to vector<13x3xf32>
    %cst_235 = arith.constant dense<0.000000e+00> : vector<13x8xf32>
    %193 = tpu.matmul %192, %190, %cst_235 {dimension_numbers = #tpu.dot_dimension_numbers<[1], [0], [0], [1], [0, 0, 1, 1], [], []>} : vector<13x3xf32>, vector<3x8xf32>, vector<13x8xf32> -> vector<13x8xf32>
    %194 = arith.addf %188, %193 : vector<13x8xf32>
    %c0_236 = arith.constant 0 : index
    %c3_237 = arith.constant 3 : index
    %c0_238 = arith.constant 0 : index
    %c0_239 = arith.constant 0 : index
    %195 = vector.load %arg4[%c0_236, %c3_237, %c0_238, %c0_239] : memref<1x8x3x9xf32, #tpu.memory_space<vmem>>, vector<1x1x3x8xf32>
    %196 = vector.shape_cast %195 : vector<1x1x3x8xf32> to vector<3x8xf32>
    %c3_240 = arith.constant 3 : index
    %c0_241 = arith.constant 0 : index
    %c0_242 = arith.constant 0 : index
    %197 = vector.load %arg8[%c3_240, %c0_241, %c0_242] : memref<9x13x3xf32, #tpu.memory_space<vmem>>, vector<1x13x3xf32>
    %198 = vector.shape_cast %197 : vector<1x13x3xf32> to vector<13x3xf32>
    %cst_243 = arith.constant dense<0.000000e+00> : vector<13x8xf32>
    %199 = tpu.matmul %198, %196, %cst_243 {dimension_numbers = #tpu.dot_dimension_numbers<[1], [0], [0], [1], [0, 0, 1, 1], [], []>} : vector<13x3xf32>, vector<3x8xf32>, vector<13x8xf32> -> vector<13x8xf32>
    %200 = arith.addf %194, %199 : vector<13x8xf32>
    %c0_244 = arith.constant 0 : index
    %c3_245 = arith.constant 3 : index
    %c0_246 = arith.constant 0 : index
    %c0_247 = arith.constant 0 : index
    %201 = vector.load %arg5[%c0_244, %c3_245, %c0_246, %c0_247] : memref<1x8x3x9xf32, #tpu.memory_space<vmem>>, vector<1x1x3x8xf32>
    %202 = vector.shape_cast %201 : vector<1x1x3x8xf32> to vector<3x8xf32>
    %c4_248 = arith.constant 4 : index
    %c0_249 = arith.constant 0 : index
    %c0_250 = arith.constant 0 : index
    %203 = vector.load %arg8[%c4_248, %c0_249, %c0_250] : memref<9x13x3xf32, #tpu.memory_space<vmem>>, vector<1x13x3xf32>
    %204 = vector.shape_cast %203 : vector<1x13x3xf32> to vector<13x3xf32>
    %cst_251 = arith.constant dense<0.000000e+00> : vector<13x8xf32>
    %205 = tpu.matmul %204, %202, %cst_251 {dimension_numbers = #tpu.dot_dimension_numbers<[1], [0], [0], [1], [0, 0, 1, 1], [], []>} : vector<13x3xf32>, vector<3x8xf32>, vector<13x8xf32> -> vector<13x8xf32>
    %206 = arith.addf %200, %205 : vector<13x8xf32>
    %c0_252 = arith.constant 0 : index
    %c3_253 = arith.constant 3 : index
    %c0_254 = arith.constant 0 : index
    %c1_255 = arith.constant 1 : index
    %207 = vector.load %arg4[%c0_252, %c3_253, %c0_254, %c1_255] : memref<1x8x3x9xf32, #tpu.memory_space<vmem>>, vector<1x1x3x8xf32>
    %208 = vector.shape_cast %207 : vector<1x1x3x8xf32> to vector<3x8xf32>
    %c5_256 = arith.constant 5 : index
    %c0_257 = arith.constant 0 : index
    %c0_258 = arith.constant 0 : index
    %209 = vector.load %arg8[%c5_256, %c0_257, %c0_258] : memref<9x13x3xf32, #tpu.memory_space<vmem>>, vector<1x13x3xf32>
    %210 = vector.shape_cast %209 : vector<1x13x3xf32> to vector<13x3xf32>
    %cst_259 = arith.constant dense<0.000000e+00> : vector<13x8xf32>
    %211 = tpu.matmul %210, %208, %cst_259 {dimension_numbers = #tpu.dot_dimension_numbers<[1], [0], [0], [1], [0, 0, 1, 1], [], []>} : vector<13x3xf32>, vector<3x8xf32>, vector<13x8xf32> -> vector<13x8xf32>
    %212 = arith.addf %206, %211 : vector<13x8xf32>
    %c0_260 = arith.constant 0 : index
    %c3_261 = arith.constant 3 : index
    %c0_262 = arith.constant 0 : index
    %c0_263 = arith.constant 0 : index
    %213 = vector.load %arg6[%c0_260, %c3_261, %c0_262, %c0_263] : memref<1x8x3x9xf32, #tpu.memory_space<vmem>>, vector<1x1x3x8xf32>
    %214 = vector.shape_cast %213 : vector<1x1x3x8xf32> to vector<3x8xf32>
    %c6_264 = arith.constant 6 : index
    %c0_265 = arith.constant 0 : index
    %c0_266 = arith.constant 0 : index
    %215 = vector.load %arg8[%c6_264, %c0_265, %c0_266] : memref<9x13x3xf32, #tpu.memory_space<vmem>>, vector<1x13x3xf32>
    %216 = vector.shape_cast %215 : vector<1x13x3xf32> to vector<13x3xf32>
    %cst_267 = arith.constant dense<0.000000e+00> : vector<13x8xf32>
    %217 = tpu.matmul %216, %214, %cst_267 {dimension_numbers = #tpu.dot_dimension_numbers<[1], [0], [0], [1], [0, 0, 1, 1], [], []>} : vector<13x3xf32>, vector<3x8xf32>, vector<13x8xf32> -> vector<13x8xf32>
    %218 = arith.addf %212, %217 : vector<13x8xf32>
    %c0_268 = arith.constant 0 : index
    %c3_269 = arith.constant 3 : index
    %c0_270 = arith.constant 0 : index
    %c0_271 = arith.constant 0 : index
    %219 = vector.load %arg7[%c0_268, %c3_269, %c0_270, %c0_271] : memref<1x8x3x9xf32, #tpu.memory_space<vmem>>, vector<1x1x3x8xf32>
    %220 = vector.shape_cast %219 : vector<1x1x3x8xf32> to vector<3x8xf32>
    %c7_272 = arith.constant 7 : index
    %c0_273 = arith.constant 0 : index
    %c0_274 = arith.constant 0 : index
    %221 = vector.load %arg8[%c7_272, %c0_273, %c0_274] : memref<9x13x3xf32, #tpu.memory_space<vmem>>, vector<1x13x3xf32>
    %222 = vector.shape_cast %221 : vector<1x13x3xf32> to vector<13x3xf32>
    %cst_275 = arith.constant dense<0.000000e+00> : vector<13x8xf32>
    %223 = tpu.matmul %222, %220, %cst_275 {dimension_numbers = #tpu.dot_dimension_numbers<[1], [0], [0], [1], [0, 0, 1, 1], [], []>} : vector<13x3xf32>, vector<3x8xf32>, vector<13x8xf32> -> vector<13x8xf32>
    %224 = arith.addf %218, %223 : vector<13x8xf32>
    %c0_276 = arith.constant 0 : index
    %c3_277 = arith.constant 3 : index
    %c0_278 = arith.constant 0 : index
    %c1_279 = arith.constant 1 : index
    %225 = vector.load %arg6[%c0_276, %c3_277, %c0_278, %c1_279] : memref<1x8x3x9xf32, #tpu.memory_space<vmem>>, vector<1x1x3x8xf32>
    %226 = vector.shape_cast %225 : vector<1x1x3x8xf32> to vector<3x8xf32>
    %c8_280 = arith.constant 8 : index
    %c0_281 = arith.constant 0 : index
    %c0_282 = arith.constant 0 : index
    %227 = vector.load %arg8[%c8_280, %c0_281, %c0_282] : memref<9x13x3xf32, #tpu.memory_space<vmem>>, vector<1x13x3xf32>
    %228 = vector.shape_cast %227 : vector<1x13x3xf32> to vector<13x3xf32>
    %cst_283 = arith.constant dense<0.000000e+00> : vector<13x8xf32>
    %229 = tpu.matmul %228, %226, %cst_283 {dimension_numbers = #tpu.dot_dimension_numbers<[1], [0], [0], [1], [0, 0, 1, 1], [], []>} : vector<13x3xf32>, vector<3x8xf32>, vector<13x8xf32> -> vector<13x8xf32>
    %230 = arith.addf %224, %229 : vector<13x8xf32>
    %231 = arith.addf %173, %230 : vector<13x8xf32>
    %232 = arith.mulf %230, %230 : vector<13x8xf32>
    %233 = arith.addf %175, %232 : vector<13x8xf32>
    %cst_284 = arith.constant 0.000000e+00 : f32
    %234 = vector.broadcast %cst_284 : f32 to vector<13x8xf32>
    %c0_285 = arith.constant 0 : index
    %c4_286 = arith.constant 4 : index
    %c0_287 = arith.constant 0 : index
    %c0_288 = arith.constant 0 : index
    %235 = vector.load %arg2[%c0_285, %c4_286, %c0_287, %c0_288] : memref<1x8x3x9xf32, #tpu.memory_space<vmem>>, vector<1x1x3x8xf32>
    %236 = vector.shape_cast %235 : vector<1x1x3x8xf32> to vector<3x8xf32>
    %c0_289 = arith.constant 0 : index
    %c0_290 = arith.constant 0 : index
    %c0_291 = arith.constant 0 : index
    %237 = vector.load %arg8[%c0_289, %c0_290, %c0_291] : memref<9x13x3xf32, #tpu.memory_space<vmem>>, vector<1x13x3xf32>
    %238 = vector.shape_cast %237 : vector<1x13x3xf32> to vector<13x3xf32>
    %cst_292 = arith.constant dense<0.000000e+00> : vector<13x8xf32>
    %239 = tpu.matmul %238, %236, %cst_292 {dimension_numbers = #tpu.dot_dimension_numbers<[1], [0], [0], [1], [0, 0, 1, 1], [], []>} : vector<13x3xf32>, vector<3x8xf32>, vector<13x8xf32> -> vector<13x8xf32>
    %240 = arith.addf %234, %239 : vector<13x8xf32>
    %c0_293 = arith.constant 0 : index
    %c4_294 = arith.constant 4 : index
    %c0_295 = arith.constant 0 : index
    %c0_296 = arith.constant 0 : index
    %241 = vector.load %arg3[%c0_293, %c4_294, %c0_295, %c0_296] : memref<1x8x3x9xf32, #tpu.memory_space<vmem>>, vector<1x1x3x8xf32>
    %242 = vector.shape_cast %241 : vector<1x1x3x8xf32> to vector<3x8xf32>
    %c1_297 = arith.constant 1 : index
    %c0_298 = arith.constant 0 : index
    %c0_299 = arith.constant 0 : index
    %243 = vector.load %arg8[%c1_297, %c0_298, %c0_299] : memref<9x13x3xf32, #tpu.memory_space<vmem>>, vector<1x13x3xf32>
    %244 = vector.shape_cast %243 : vector<1x13x3xf32> to vector<13x3xf32>
    %cst_300 = arith.constant dense<0.000000e+00> : vector<13x8xf32>
    %245 = tpu.matmul %244, %242, %cst_300 {dimension_numbers = #tpu.dot_dimension_numbers<[1], [0], [0], [1], [0, 0, 1, 1], [], []>} : vector<13x3xf32>, vector<3x8xf32>, vector<13x8xf32> -> vector<13x8xf32>
    %246 = arith.addf %240, %245 : vector<13x8xf32>
    %c0_301 = arith.constant 0 : index
    %c4_302 = arith.constant 4 : index
    %c0_303 = arith.constant 0 : index
    %c1_304 = arith.constant 1 : index
    %247 = vector.load %arg2[%c0_301, %c4_302, %c0_303, %c1_304] : memref<1x8x3x9xf32, #tpu.memory_space<vmem>>, vector<1x1x3x8xf32>
    %248 = vector.shape_cast %247 : vector<1x1x3x8xf32> to vector<3x8xf32>
    %c2_305 = arith.constant 2 : index
    %c0_306 = arith.constant 0 : index
    %c0_307 = arith.constant 0 : index
    %249 = vector.load %arg8[%c2_305, %c0_306, %c0_307] : memref<9x13x3xf32, #tpu.memory_space<vmem>>, vector<1x13x3xf32>
    %250 = vector.shape_cast %249 : vector<1x13x3xf32> to vector<13x3xf32>
    %cst_308 = arith.constant dense<0.000000e+00> : vector<13x8xf32>
    %251 = tpu.matmul %250, %248, %cst_308 {dimension_numbers = #tpu.dot_dimension_numbers<[1], [0], [0], [1], [0, 0, 1, 1], [], []>} : vector<13x3xf32>, vector<3x8xf32>, vector<13x8xf32> -> vector<13x8xf32>
    %252 = arith.addf %246, %251 : vector<13x8xf32>
    %c0_309 = arith.constant 0 : index
    %c4_310 = arith.constant 4 : index
    %c0_311 = arith.constant 0 : index
    %c0_312 = arith.constant 0 : index
    %253 = vector.load %arg4[%c0_309, %c4_310, %c0_311, %c0_312] : memref<1x8x3x9xf32, #tpu.memory_space<vmem>>, vector<1x1x3x8xf32>
    %254 = vector.shape_cast %253 : vector<1x1x3x8xf32> to vector<3x8xf32>
    %c3_313 = arith.constant 3 : index
    %c0_314 = arith.constant 0 : index
    %c0_315 = arith.constant 0 : index
    %255 = vector.load %arg8[%c3_313, %c0_314, %c0_315] : memref<9x13x3xf32, #tpu.memory_space<vmem>>, vector<1x13x3xf32>
    %256 = vector.shape_cast %255 : vector<1x13x3xf32> to vector<13x3xf32>
    %cst_316 = arith.constant dense<0.000000e+00> : vector<13x8xf32>
    %257 = tpu.matmul %256, %254, %cst_316 {dimension_numbers = #tpu.dot_dimension_numbers<[1], [0], [0], [1], [0, 0, 1, 1], [], []>} : vector<13x3xf32>, vector<3x8xf32>, vector<13x8xf32> -> vector<13x8xf32>
    %258 = arith.addf %252, %257 : vector<13x8xf32>
    %c0_317 = arith.constant 0 : index
    %c4_318 = arith.constant 4 : index
    %c0_319 = arith.constant 0 : index
    %c0_320 = arith.constant 0 : index
    %259 = vector.load %arg5[%c0_317, %c4_318, %c0_319, %c0_320] : memref<1x8x3x9xf32, #tpu.memory_space<vmem>>, vector<1x1x3x8xf32>
    %260 = vector.shape_cast %259 : vector<1x1x3x8xf32> to vector<3x8xf32>
    %c4_321 = arith.constant 4 : index
    %c0_322 = arith.constant 0 : index
    %c0_323 = arith.constant 0 : index
    %261 = vector.load %arg8[%c4_321, %c0_322, %c0_323] : memref<9x13x3xf32, #tpu.memory_space<vmem>>, vector<1x13x3xf32>
    %262 = vector.shape_cast %261 : vector<1x13x3xf32> to vector<13x3xf32>
    %cst_324 = arith.constant dense<0.000000e+00> : vector<13x8xf32>
    %263 = tpu.matmul %262, %260, %cst_324 {dimension_numbers = #tpu.dot_dimension_numbers<[1], [0], [0], [1], [0, 0, 1, 1], [], []>} : vector<13x3xf32>, vector<3x8xf32>, vector<13x8xf32> -> vector<13x8xf32>
    %264 = arith.addf %258, %263 : vector<13x8xf32>
    %c0_325 = arith.constant 0 : index
    %c4_326 = arith.constant 4 : index
    %c0_327 = arith.constant 0 : index
    %c1_328 = arith.constant 1 : index
    %265 = vector.load %arg4[%c0_325, %c4_326, %c0_327, %c1_328] : memref<1x8x3x9xf32, #tpu.memory_space<vmem>>, vector<1x1x3x8xf32>
    %266 = vector.shape_cast %265 : vector<1x1x3x8xf32> to vector<3x8xf32>
    %c5_329 = arith.constant 5 : index
    %c0_330 = arith.constant 0 : index
    %c0_331 = arith.constant 0 : index
    %267 = vector.load %arg8[%c5_329, %c0_330, %c0_331] : memref<9x13x3xf32, #tpu.memory_space<vmem>>, vector<1x13x3xf32>
    %268 = vector.shape_cast %267 : vector<1x13x3xf32> to vector<13x3xf32>
    %cst_332 = arith.constant dense<0.000000e+00> : vector<13x8xf32>
    %269 = tpu.matmul %268, %266, %cst_332 {dimension_numbers = #tpu.dot_dimension_numbers<[1], [0], [0], [1], [0, 0, 1, 1], [], []>} : vector<13x3xf32>, vector<3x8xf32>, vector<13x8xf32> -> vector<13x8xf32>
    %270 = arith.addf %264, %269 : vector<13x8xf32>
    %c0_333 = arith.constant 0 : index
    %c4_334 = arith.constant 4 : index
    %c0_335 = arith.constant 0 : index
    %c0_336 = arith.constant 0 : index
    %271 = vector.load %arg6[%c0_333, %c4_334, %c0_335, %c0_336] : memref<1x8x3x9xf32, #tpu.memory_space<vmem>>, vector<1x1x3x8xf32>
    %272 = vector.shape_cast %271 : vector<1x1x3x8xf32> to vector<3x8xf32>
    %c6_337 = arith.constant 6 : index
    %c0_338 = arith.constant 0 : index
    %c0_339 = arith.constant 0 : index
    %273 = vector.load %arg8[%c6_337, %c0_338, %c0_339] : memref<9x13x3xf32, #tpu.memory_space<vmem>>, vector<1x13x3xf32>
    %274 = vector.shape_cast %273 : vector<1x13x3xf32> to vector<13x3xf32>
    %cst_340 = arith.constant dense<0.000000e+00> : vector<13x8xf32>
    %275 = tpu.matmul %274, %272, %cst_340 {dimension_numbers = #tpu.dot_dimension_numbers<[1], [0], [0], [1], [0, 0, 1, 1], [], []>} : vector<13x3xf32>, vector<3x8xf32>, vector<13x8xf32> -> vector<13x8xf32>
    %276 = arith.addf %270, %275 : vector<13x8xf32>
    %c0_341 = arith.constant 0 : index
    %c4_342 = arith.constant 4 : index
    %c0_343 = arith.constant 0 : index
    %c0_344 = arith.constant 0 : index
    %277 = vector.load %arg7[%c0_341, %c4_342, %c0_343, %c0_344] : memref<1x8x3x9xf32, #tpu.memory_space<vmem>>, vector<1x1x3x8xf32>
    %278 = vector.shape_cast %277 : vector<1x1x3x8xf32> to vector<3x8xf32>
    %c7_345 = arith.constant 7 : index
    %c0_346 = arith.constant 0 : index
    %c0_347 = arith.constant 0 : index
    %279 = vector.load %arg8[%c7_345, %c0_346, %c0_347] : memref<9x13x3xf32, #tpu.memory_space<vmem>>, vector<1x13x3xf32>
    %280 = vector.shape_cast %279 : vector<1x13x3xf32> to vector<13x3xf32>
    %cst_348 = arith.constant dense<0.000000e+00> : vector<13x8xf32>
    %281 = tpu.matmul %280, %278, %cst_348 {dimension_numbers = #tpu.dot_dimension_numbers<[1], [0], [0], [1], [0, 0, 1, 1], [], []>} : vector<13x3xf32>, vector<3x8xf32>, vector<13x8xf32> -> vector<13x8xf32>
    %282 = arith.addf %276, %281 : vector<13x8xf32>
    %c0_349 = arith.constant 0 : index
    %c4_350 = arith.constant 4 : index
    %c0_351 = arith.constant 0 : index
    %c1_352 = arith.constant 1 : index
    %283 = vector.load %arg6[%c0_349, %c4_350, %c0_351, %c1_352] : memref<1x8x3x9xf32, #tpu.memory_space<vmem>>, vector<1x1x3x8xf32>
    %284 = vector.shape_cast %283 : vector<1x1x3x8xf32> to vector<3x8xf32>
    %c8_353 = arith.constant 8 : index
    %c0_354 = arith.constant 0 : index
    %c0_355 = arith.constant 0 : index
    %285 = vector.load %arg8[%c8_353, %c0_354, %c0_355] : memref<9x13x3xf32, #tpu.memory_space<vmem>>, vector<1x13x3xf32>
    %286 = vector.shape_cast %285 : vector<1x13x3xf32> to vector<13x3xf32>
    %cst_356 = arith.constant dense<0.000000e+00> : vector<13x8xf32>
    %287 = tpu.matmul %286, %284, %cst_356 {dimension_numbers = #tpu.dot_dimension_numbers<[1], [0], [0], [1], [0, 0, 1, 1], [], []>} : vector<13x3xf32>, vector<3x8xf32>, vector<13x8xf32> -> vector<13x8xf32>
    %288 = arith.addf %282, %287 : vector<13x8xf32>
    %289 = arith.addf %231, %288 : vector<13x8xf32>
    %290 = arith.mulf %288, %288 : vector<13x8xf32>
    %291 = arith.addf %233, %290 : vector<13x8xf32>
    %cst_357 = arith.constant 0.000000e+00 : f32
    %292 = vector.broadcast %cst_357 : f32 to vector<13x8xf32>
    %c0_358 = arith.constant 0 : index
    %c5_359 = arith.constant 5 : index
    %c0_360 = arith.constant 0 : index
    %c0_361 = arith.constant 0 : index
    %293 = vector.load %arg2[%c0_358, %c5_359, %c0_360, %c0_361] : memref<1x8x3x9xf32, #tpu.memory_space<vmem>>, vector<1x1x3x8xf32>
    %294 = vector.shape_cast %293 : vector<1x1x3x8xf32> to vector<3x8xf32>
    %c0_362 = arith.constant 0 : index
    %c0_363 = arith.constant 0 : index
    %c0_364 = arith.constant 0 : index
    %295 = vector.load %arg8[%c0_362, %c0_363, %c0_364] : memref<9x13x3xf32, #tpu.memory_space<vmem>>, vector<1x13x3xf32>
    %296 = vector.shape_cast %295 : vector<1x13x3xf32> to vector<13x3xf32>
    %cst_365 = arith.constant dense<0.000000e+00> : vector<13x8xf32>
    %297 = tpu.matmul %296, %294, %cst_365 {dimension_numbers = #tpu.dot_dimension_numbers<[1], [0], [0], [1], [0, 0, 1, 1], [], []>} : vector<13x3xf32>, vector<3x8xf32>, vector<13x8xf32> -> vector<13x8xf32>
    %298 = arith.addf %292, %297 : vector<13x8xf32>
    %c0_366 = arith.constant 0 : index
    %c5_367 = arith.constant 5 : index
    %c0_368 = arith.constant 0 : index
    %c0_369 = arith.constant 0 : index
    %299 = vector.load %arg3[%c0_366, %c5_367, %c0_368, %c0_369] : memref<1x8x3x9xf32, #tpu.memory_space<vmem>>, vector<1x1x3x8xf32>
    %300 = vector.shape_cast %299 : vector<1x1x3x8xf32> to vector<3x8xf32>
    %c1_370 = arith.constant 1 : index
    %c0_371 = arith.constant 0 : index
    %c0_372 = arith.constant 0 : index
    %301 = vector.load %arg8[%c1_370, %c0_371, %c0_372] : memref<9x13x3xf32, #tpu.memory_space<vmem>>, vector<1x13x3xf32>
    %302 = vector.shape_cast %301 : vector<1x13x3xf32> to vector<13x3xf32>
    %cst_373 = arith.constant dense<0.000000e+00> : vector<13x8xf32>
    %303 = tpu.matmul %302, %300, %cst_373 {dimension_numbers = #tpu.dot_dimension_numbers<[1], [0], [0], [1], [0, 0, 1, 1], [], []>} : vector<13x3xf32>, vector<3x8xf32>, vector<13x8xf32> -> vector<13x8xf32>
    %304 = arith.addf %298, %303 : vector<13x8xf32>
    %c0_374 = arith.constant 0 : index
    %c5_375 = arith.constant 5 : index
    %c0_376 = arith.constant 0 : index
    %c1_377 = arith.constant 1 : index
    %305 = vector.load %arg2[%c0_374, %c5_375, %c0_376, %c1_377] : memref<1x8x3x9xf32, #tpu.memory_space<vmem>>, vector<1x1x3x8xf32>
    %306 = vector.shape_cast %305 : vector<1x1x3x8xf32> to vector<3x8xf32>
    %c2_378 = arith.constant 2 : index
    %c0_379 = arith.constant 0 : index
    %c0_380 = arith.constant 0 : index
    %307 = vector.load %arg8[%c2_378, %c0_379, %c0_380] : memref<9x13x3xf32, #tpu.memory_space<vmem>>, vector<1x13x3xf32>
    %308 = vector.shape_cast %307 : vector<1x13x3xf32> to vector<13x3xf32>
    %cst_381 = arith.constant dense<0.000000e+00> : vector<13x8xf32>
    %309 = tpu.matmul %308, %306, %cst_381 {dimension_numbers = #tpu.dot_dimension_numbers<[1], [0], [0], [1], [0, 0, 1, 1], [], []>} : vector<13x3xf32>, vector<3x8xf32>, vector<13x8xf32> -> vector<13x8xf32>
    %310 = arith.addf %304, %309 : vector<13x8xf32>
    %c0_382 = arith.constant 0 : index
    %c5_383 = arith.constant 5 : index
    %c0_384 = arith.constant 0 : index
    %c0_385 = arith.constant 0 : index
    %311 = vector.load %arg4[%c0_382, %c5_383, %c0_384, %c0_385] : memref<1x8x3x9xf32, #tpu.memory_space<vmem>>, vector<1x1x3x8xf32>
    %312 = vector.shape_cast %311 : vector<1x1x3x8xf32> to vector<3x8xf32>
    %c3_386 = arith.constant 3 : index
    %c0_387 = arith.constant 0 : index
    %c0_388 = arith.constant 0 : index
    %313 = vector.load %arg8[%c3_386, %c0_387, %c0_388] : memref<9x13x3xf32, #tpu.memory_space<vmem>>, vector<1x13x3xf32>
    %314 = vector.shape_cast %313 : vector<1x13x3xf32> to vector<13x3xf32>
    %cst_389 = arith.constant dense<0.000000e+00> : vector<13x8xf32>
    %315 = tpu.matmul %314, %312, %cst_389 {dimension_numbers = #tpu.dot_dimension_numbers<[1], [0], [0], [1], [0, 0, 1, 1], [], []>} : vector<13x3xf32>, vector<3x8xf32>, vector<13x8xf32> -> vector<13x8xf32>
    %316 = arith.addf %310, %315 : vector<13x8xf32>
    %c0_390 = arith.constant 0 : index
    %c5_391 = arith.constant 5 : index
    %c0_392 = arith.constant 0 : index
    %c0_393 = arith.constant 0 : index
    %317 = vector.load %arg5[%c0_390, %c5_391, %c0_392, %c0_393] : memref<1x8x3x9xf32, #tpu.memory_space<vmem>>, vector<1x1x3x8xf32>
    %318 = vector.shape_cast %317 : vector<1x1x3x8xf32> to vector<3x8xf32>
    %c4_394 = arith.constant 4 : index
    %c0_395 = arith.constant 0 : index
    %c0_396 = arith.constant 0 : index
    %319 = vector.load %arg8[%c4_394, %c0_395, %c0_396] : memref<9x13x3xf32, #tpu.memory_space<vmem>>, vector<1x13x3xf32>
    %320 = vector.shape_cast %319 : vector<1x13x3xf32> to vector<13x3xf32>
    %cst_397 = arith.constant dense<0.000000e+00> : vector<13x8xf32>
    %321 = tpu.matmul %320, %318, %cst_397 {dimension_numbers = #tpu.dot_dimension_numbers<[1], [0], [0], [1], [0, 0, 1, 1], [], []>} : vector<13x3xf32>, vector<3x8xf32>, vector<13x8xf32> -> vector<13x8xf32>
    %322 = arith.addf %316, %321 : vector<13x8xf32>
    %c0_398 = arith.constant 0 : index
    %c5_399 = arith.constant 5 : index
    %c0_400 = arith.constant 0 : index
    %c1_401 = arith.constant 1 : index
    %323 = vector.load %arg4[%c0_398, %c5_399, %c0_400, %c1_401] : memref<1x8x3x9xf32, #tpu.memory_space<vmem>>, vector<1x1x3x8xf32>
    %324 = vector.shape_cast %323 : vector<1x1x3x8xf32> to vector<3x8xf32>
    %c5_402 = arith.constant 5 : index
    %c0_403 = arith.constant 0 : index
    %c0_404 = arith.constant 0 : index
    %325 = vector.load %arg8[%c5_402, %c0_403, %c0_404] : memref<9x13x3xf32, #tpu.memory_space<vmem>>, vector<1x13x3xf32>
    %326 = vector.shape_cast %325 : vector<1x13x3xf32> to vector<13x3xf32>
    %cst_405 = arith.constant dense<0.000000e+00> : vector<13x8xf32>
    %327 = tpu.matmul %326, %324, %cst_405 {dimension_numbers = #tpu.dot_dimension_numbers<[1], [0], [0], [1], [0, 0, 1, 1], [], []>} : vector<13x3xf32>, vector<3x8xf32>, vector<13x8xf32> -> vector<13x8xf32>
    %328 = arith.addf %322, %327 : vector<13x8xf32>
    %c0_406 = arith.constant 0 : index
    %c5_407 = arith.constant 5 : index
    %c0_408 = arith.constant 0 : index
    %c0_409 = arith.constant 0 : index
    %329 = vector.load %arg6[%c0_406, %c5_407, %c0_408, %c0_409] : memref<1x8x3x9xf32, #tpu.memory_space<vmem>>, vector<1x1x3x8xf32>
    %330 = vector.shape_cast %329 : vector<1x1x3x8xf32> to vector<3x8xf32>
    %c6_410 = arith.constant 6 : index
    %c0_411 = arith.constant 0 : index
    %c0_412 = arith.constant 0 : index
    %331 = vector.load %arg8[%c6_410, %c0_411, %c0_412] : memref<9x13x3xf32, #tpu.memory_space<vmem>>, vector<1x13x3xf32>
    %332 = vector.shape_cast %331 : vector<1x13x3xf32> to vector<13x3xf32>
    %cst_413 = arith.constant dense<0.000000e+00> : vector<13x8xf32>
    %333 = tpu.matmul %332, %330, %cst_413 {dimension_numbers = #tpu.dot_dimension_numbers<[1], [0], [0], [1], [0, 0, 1, 1], [], []>} : vector<13x3xf32>, vector<3x8xf32>, vector<13x8xf32> -> vector<13x8xf32>
    %334 = arith.addf %328, %333 : vector<13x8xf32>
    %c0_414 = arith.constant 0 : index
    %c5_415 = arith.constant 5 : index
    %c0_416 = arith.constant 0 : index
    %c0_417 = arith.constant 0 : index
    %335 = vector.load %arg7[%c0_414, %c5_415, %c0_416, %c0_417] : memref<1x8x3x9xf32, #tpu.memory_space<vmem>>, vector<1x1x3x8xf32>
    %336 = vector.shape_cast %335 : vector<1x1x3x8xf32> to vector<3x8xf32>
    %c7_418 = arith.constant 7 : index
    %c0_419 = arith.constant 0 : index
    %c0_420 = arith.constant 0 : index
    %337 = vector.load %arg8[%c7_418, %c0_419, %c0_420] : memref<9x13x3xf32, #tpu.memory_space<vmem>>, vector<1x13x3xf32>
    %338 = vector.shape_cast %337 : vector<1x13x3xf32> to vector<13x3xf32>
    %cst_421 = arith.constant dense<0.000000e+00> : vector<13x8xf32>
    %339 = tpu.matmul %338, %336, %cst_421 {dimension_numbers = #tpu.dot_dimension_numbers<[1], [0], [0], [1], [0, 0, 1, 1], [], []>} : vector<13x3xf32>, vector<3x8xf32>, vector<13x8xf32> -> vector<13x8xf32>
    %340 = arith.addf %334, %339 : vector<13x8xf32>
    %c0_422 = arith.constant 0 : index
    %c5_423 = arith.constant 5 : index
    %c0_424 = arith.constant 0 : index
    %c1_425 = arith.constant 1 : index
    %341 = vector.load %arg6[%c0_422, %c5_423, %c0_424, %c1_425] : memref<1x8x3x9xf32, #tpu.memory_space<vmem>>, vector<1x1x3x8xf32>
    %342 = vector.shape_cast %341 : vector<1x1x3x8xf32> to vector<3x8xf32>
    %c8_426 = arith.constant 8 : index
    %c0_427 = arith.constant 0 : index
    %c0_428 = arith.constant 0 : index
    %343 = vector.load %arg8[%c8_426, %c0_427, %c0_428] : memref<9x13x3xf32, #tpu.memory_space<vmem>>, vector<1x13x3xf32>
    %344 = vector.shape_cast %343 : vector<1x13x3xf32> to vector<13x3xf32>
    %cst_429 = arith.constant dense<0.000000e+00> : vector<13x8xf32>
    %345 = tpu.matmul %344, %342, %cst_429 {dimension_numbers = #tpu.dot_dimension_numbers<[1], [0], [0], [1], [0, 0, 1, 1], [], []>} : vector<13x3xf32>, vector<3x8xf32>, vector<13x8xf32> -> vector<13x8xf32>
    %346 = arith.addf %340, %345 : vector<13x8xf32>
    %347 = arith.addf %289, %346 : vector<13x8xf32>
    %348 = arith.mulf %346, %346 : vector<13x8xf32>
    %349 = arith.addf %291, %348 : vector<13x8xf32>
    %cst_430 = arith.constant 0.000000e+00 : f32
    %350 = vector.broadcast %cst_430 : f32 to vector<13x8xf32>
    %c0_431 = arith.constant 0 : index
    %c6_432 = arith.constant 6 : index
    %c0_433 = arith.constant 0 : index
    %c0_434 = arith.constant 0 : index
    %351 = vector.load %arg2[%c0_431, %c6_432, %c0_433, %c0_434] : memref<1x8x3x9xf32, #tpu.memory_space<vmem>>, vector<1x1x3x8xf32>
    %352 = vector.shape_cast %351 : vector<1x1x3x8xf32> to vector<3x8xf32>
    %c0_435 = arith.constant 0 : index
    %c0_436 = arith.constant 0 : index
    %c0_437 = arith.constant 0 : index
    %353 = vector.load %arg8[%c0_435, %c0_436, %c0_437] : memref<9x13x3xf32, #tpu.memory_space<vmem>>, vector<1x13x3xf32>
    %354 = vector.shape_cast %353 : vector<1x13x3xf32> to vector<13x3xf32>
    %cst_438 = arith.constant dense<0.000000e+00> : vector<13x8xf32>
    %355 = tpu.matmul %354, %352, %cst_438 {dimension_numbers = #tpu.dot_dimension_numbers<[1], [0], [0], [1], [0, 0, 1, 1], [], []>} : vector<13x3xf32>, vector<3x8xf32>, vector<13x8xf32> -> vector<13x8xf32>
    %356 = arith.addf %350, %355 : vector<13x8xf32>
    %c0_439 = arith.constant 0 : index
    %c6_440 = arith.constant 6 : index
    %c0_441 = arith.constant 0 : index
    %c0_442 = arith.constant 0 : index
    %357 = vector.load %arg3[%c0_439, %c6_440, %c0_441, %c0_442] : memref<1x8x3x9xf32, #tpu.memory_space<vmem>>, vector<1x1x3x8xf32>
    %358 = vector.shape_cast %357 : vector<1x1x3x8xf32> to vector<3x8xf32>
    %c1_443 = arith.constant 1 : index
    %c0_444 = arith.constant 0 : index
    %c0_445 = arith.constant 0 : index
    %359 = vector.load %arg8[%c1_443, %c0_444, %c0_445] : memref<9x13x3xf32, #tpu.memory_space<vmem>>, vector<1x13x3xf32>
    %360 = vector.shape_cast %359 : vector<1x13x3xf32> to vector<13x3xf32>
    %cst_446 = arith.constant dense<0.000000e+00> : vector<13x8xf32>
    %361 = tpu.matmul %360, %358, %cst_446 {dimension_numbers = #tpu.dot_dimension_numbers<[1], [0], [0], [1], [0, 0, 1, 1], [], []>} : vector<13x3xf32>, vector<3x8xf32>, vector<13x8xf32> -> vector<13x8xf32>
    %362 = arith.addf %356, %361 : vector<13x8xf32>
    %c0_447 = arith.constant 0 : index
    %c6_448 = arith.constant 6 : index
    %c0_449 = arith.constant 0 : index
    %c1_450 = arith.constant 1 : index
    %363 = vector.load %arg2[%c0_447, %c6_448, %c0_449, %c1_450] : memref<1x8x3x9xf32, #tpu.memory_space<vmem>>, vector<1x1x3x8xf32>
    %364 = vector.shape_cast %363 : vector<1x1x3x8xf32> to vector<3x8xf32>
    %c2_451 = arith.constant 2 : index
    %c0_452 = arith.constant 0 : index
    %c0_453 = arith.constant 0 : index
    %365 = vector.load %arg8[%c2_451, %c0_452, %c0_453] : memref<9x13x3xf32, #tpu.memory_space<vmem>>, vector<1x13x3xf32>
    %366 = vector.shape_cast %365 : vector<1x13x3xf32> to vector<13x3xf32>
    %cst_454 = arith.constant dense<0.000000e+00> : vector<13x8xf32>
    %367 = tpu.matmul %366, %364, %cst_454 {dimension_numbers = #tpu.dot_dimension_numbers<[1], [0], [0], [1], [0, 0, 1, 1], [], []>} : vector<13x3xf32>, vector<3x8xf32>, vector<13x8xf32> -> vector<13x8xf32>
    %368 = arith.addf %362, %367 : vector<13x8xf32>
    %c0_455 = arith.constant 0 : index
    %c6_456 = arith.constant 6 : index
    %c0_457 = arith.constant 0 : index
    %c0_458 = arith.constant 0 : index
    %369 = vector.load %arg4[%c0_455, %c6_456, %c0_457, %c0_458] : memref<1x8x3x9xf32, #tpu.memory_space<vmem>>, vector<1x1x3x8xf32>
    %370 = vector.shape_cast %369 : vector<1x1x3x8xf32> to vector<3x8xf32>
    %c3_459 = arith.constant 3 : index
    %c0_460 = arith.constant 0 : index
    %c0_461 = arith.constant 0 : index
    %371 = vector.load %arg8[%c3_459, %c0_460, %c0_461] : memref<9x13x3xf32, #tpu.memory_space<vmem>>, vector<1x13x3xf32>
    %372 = vector.shape_cast %371 : vector<1x13x3xf32> to vector<13x3xf32>
    %cst_462 = arith.constant dense<0.000000e+00> : vector<13x8xf32>
    %373 = tpu.matmul %372, %370, %cst_462 {dimension_numbers = #tpu.dot_dimension_numbers<[1], [0], [0], [1], [0, 0, 1, 1], [], []>} : vector<13x3xf32>, vector<3x8xf32>, vector<13x8xf32> -> vector<13x8xf32>
    %374 = arith.addf %368, %373 : vector<13x8xf32>
    %c0_463 = arith.constant 0 : index
    %c6_464 = arith.constant 6 : index
    %c0_465 = arith.constant 0 : index
    %c0_466 = arith.constant 0 : index
    %375 = vector.load %arg5[%c0_463, %c6_464, %c0_465, %c0_466] : memref<1x8x3x9xf32, #tpu.memory_space<vmem>>, vector<1x1x3x8xf32>
    %376 = vector.shape_cast %375 : vector<1x1x3x8xf32> to vector<3x8xf32>
    %c4_467 = arith.constant 4 : index
    %c0_468 = arith.constant 0 : index
    %c0_469 = arith.constant 0 : index
    %377 = vector.load %arg8[%c4_467, %c0_468, %c0_469] : memref<9x13x3xf32, #tpu.memory_space<vmem>>, vector<1x13x3xf32>
    %378 = vector.shape_cast %377 : vector<1x13x3xf32> to vector<13x3xf32>
    %cst_470 = arith.constant dense<0.000000e+00> : vector<13x8xf32>
    %379 = tpu.matmul %378, %376, %cst_470 {dimension_numbers = #tpu.dot_dimension_numbers<[1], [0], [0], [1], [0, 0, 1, 1], [], []>} : vector<13x3xf32>, vector<3x8xf32>, vector<13x8xf32> -> vector<13x8xf32>
    %380 = arith.addf %374, %379 : vector<13x8xf32>
    %c0_471 = arith.constant 0 : index
    %c6_472 = arith.constant 6 : index
    %c0_473 = arith.constant 0 : index
    %c1_474 = arith.constant 1 : index
    %381 = vector.load %arg4[%c0_471, %c6_472, %c0_473, %c1_474] : memref<1x8x3x9xf32, #tpu.memory_space<vmem>>, vector<1x1x3x8xf32>
    %382 = vector.shape_cast %381 : vector<1x1x3x8xf32> to vector<3x8xf32>
    %c5_475 = arith.constant 5 : index
    %c0_476 = arith.constant 0 : index
    %c0_477 = arith.constant 0 : index
    %383 = vector.load %arg8[%c5_475, %c0_476, %c0_477] : memref<9x13x3xf32, #tpu.memory_space<vmem>>, vector<1x13x3xf32>
    %384 = vector.shape_cast %383 : vector<1x13x3xf32> to vector<13x3xf32>
    %cst_478 = arith.constant dense<0.000000e+00> : vector<13x8xf32>
    %385 = tpu.matmul %384, %382, %cst_478 {dimension_numbers = #tpu.dot_dimension_numbers<[1], [0], [0], [1], [0, 0, 1, 1], [], []>} : vector<13x3xf32>, vector<3x8xf32>, vector<13x8xf32> -> vector<13x8xf32>
    %386 = arith.addf %380, %385 : vector<13x8xf32>
    %c0_479 = arith.constant 0 : index
    %c6_480 = arith.constant 6 : index
    %c0_481 = arith.constant 0 : index
    %c0_482 = arith.constant 0 : index
    %387 = vector.load %arg6[%c0_479, %c6_480, %c0_481, %c0_482] : memref<1x8x3x9xf32, #tpu.memory_space<vmem>>, vector<1x1x3x8xf32>
    %388 = vector.shape_cast %387 : vector<1x1x3x8xf32> to vector<3x8xf32>
    %c6_483 = arith.constant 6 : index
    %c0_484 = arith.constant 0 : index
    %c0_485 = arith.constant 0 : index
    %389 = vector.load %arg8[%c6_483, %c0_484, %c0_485] : memref<9x13x3xf32, #tpu.memory_space<vmem>>, vector<1x13x3xf32>
    %390 = vector.shape_cast %389 : vector<1x13x3xf32> to vector<13x3xf32>
    %cst_486 = arith.constant dense<0.000000e+00> : vector<13x8xf32>
    %391 = tpu.matmul %390, %388, %cst_486 {dimension_numbers = #tpu.dot_dimension_numbers<[1], [0], [0], [1], [0, 0, 1, 1], [], []>} : vector<13x3xf32>, vector<3x8xf32>, vector<13x8xf32> -> vector<13x8xf32>
    %392 = arith.addf %386, %391 : vector<13x8xf32>
    %c0_487 = arith.constant 0 : index
    %c6_488 = arith.constant 6 : index
    %c0_489 = arith.constant 0 : index
    %c0_490 = arith.constant 0 : index
    %393 = vector.load %arg7[%c0_487, %c6_488, %c0_489, %c0_490] : memref<1x8x3x9xf32, #tpu.memory_space<vmem>>, vector<1x1x3x8xf32>
    %394 = vector.shape_cast %393 : vector<1x1x3x8xf32> to vector<3x8xf32>
    %c7_491 = arith.constant 7 : index
    %c0_492 = arith.constant 0 : index
    %c0_493 = arith.constant 0 : index
    %395 = vector.load %arg8[%c7_491, %c0_492, %c0_493] : memref<9x13x3xf32, #tpu.memory_space<vmem>>, vector<1x13x3xf32>
    %396 = vector.shape_cast %395 : vector<1x13x3xf32> to vector<13x3xf32>
    %cst_494 = arith.constant dense<0.000000e+00> : vector<13x8xf32>
    %397 = tpu.matmul %396, %394, %cst_494 {dimension_numbers = #tpu.dot_dimension_numbers<[1], [0], [0], [1], [0, 0, 1, 1], [], []>} : vector<13x3xf32>, vector<3x8xf32>, vector<13x8xf32> -> vector<13x8xf32>
    %398 = arith.addf %392, %397 : vector<13x8xf32>
    %c0_495 = arith.constant 0 : index
    %c6_496 = arith.constant 6 : index
    %c0_497 = arith.constant 0 : index
    %c1_498 = arith.constant 1 : index
    %399 = vector.load %arg6[%c0_495, %c6_496, %c0_497, %c1_498] : memref<1x8x3x9xf32, #tpu.memory_space<vmem>>, vector<1x1x3x8xf32>
    %400 = vector.shape_cast %399 : vector<1x1x3x8xf32> to vector<3x8xf32>
    %c8_499 = arith.constant 8 : index
    %c0_500 = arith.constant 0 : index
    %c0_501 = arith.constant 0 : index
    %401 = vector.load %arg8[%c8_499, %c0_500, %c0_501] : memref<9x13x3xf32, #tpu.memory_space<vmem>>, vector<1x13x3xf32>
    %402 = vector.shape_cast %401 : vector<1x13x3xf32> to vector<13x3xf32>
    %cst_502 = arith.constant dense<0.000000e+00> : vector<13x8xf32>
    %403 = tpu.matmul %402, %400, %cst_502 {dimension_numbers = #tpu.dot_dimension_numbers<[1], [0], [0], [1], [0, 0, 1, 1], [], []>} : vector<13x3xf32>, vector<3x8xf32>, vector<13x8xf32> -> vector<13x8xf32>
    %404 = arith.addf %398, %403 : vector<13x8xf32>
    %405 = arith.addf %347, %404 : vector<13x8xf32>
    %406 = arith.mulf %404, %404 : vector<13x8xf32>
    %407 = arith.addf %349, %406 : vector<13x8xf32>
    %cst_503 = arith.constant 0.000000e+00 : f32
    %408 = vector.broadcast %cst_503 : f32 to vector<13x8xf32>
    %c0_504 = arith.constant 0 : index
    %c7_505 = arith.constant 7 : index
    %c0_506 = arith.constant 0 : index
    %c0_507 = arith.constant 0 : index
    %409 = vector.load %arg2[%c0_504, %c7_505, %c0_506, %c0_507] : memref<1x8x3x9xf32, #tpu.memory_space<vmem>>, vector<1x1x3x8xf32>
    %410 = vector.shape_cast %409 : vector<1x1x3x8xf32> to vector<3x8xf32>
    %c0_508 = arith.constant 0 : index
    %c0_509 = arith.constant 0 : index
    %c0_510 = arith.constant 0 : index
    %411 = vector.load %arg8[%c0_508, %c0_509, %c0_510] : memref<9x13x3xf32, #tpu.memory_space<vmem>>, vector<1x13x3xf32>
    %412 = vector.shape_cast %411 : vector<1x13x3xf32> to vector<13x3xf32>
    %cst_511 = arith.constant dense<0.000000e+00> : vector<13x8xf32>
    %413 = tpu.matmul %412, %410, %cst_511 {dimension_numbers = #tpu.dot_dimension_numbers<[1], [0], [0], [1], [0, 0, 1, 1], [], []>} : vector<13x3xf32>, vector<3x8xf32>, vector<13x8xf32> -> vector<13x8xf32>
    %414 = arith.addf %408, %413 : vector<13x8xf32>
    %c0_512 = arith.constant 0 : index
    %c7_513 = arith.constant 7 : index
    %c0_514 = arith.constant 0 : index
    %c0_515 = arith.constant 0 : index
    %415 = vector.load %arg3[%c0_512, %c7_513, %c0_514, %c0_515] : memref<1x8x3x9xf32, #tpu.memory_space<vmem>>, vector<1x1x3x8xf32>
    %416 = vector.shape_cast %415 : vector<1x1x3x8xf32> to vector<3x8xf32>
    %c1_516 = arith.constant 1 : index
    %c0_517 = arith.constant 0 : index
    %c0_518 = arith.constant 0 : index
    %417 = vector.load %arg8[%c1_516, %c0_517, %c0_518] : memref<9x13x3xf32, #tpu.memory_space<vmem>>, vector<1x13x3xf32>
    %418 = vector.shape_cast %417 : vector<1x13x3xf32> to vector<13x3xf32>
    %cst_519 = arith.constant dense<0.000000e+00> : vector<13x8xf32>
    %419 = tpu.matmul %418, %416, %cst_519 {dimension_numbers = #tpu.dot_dimension_numbers<[1], [0], [0], [1], [0, 0, 1, 1], [], []>} : vector<13x3xf32>, vector<3x8xf32>, vector<13x8xf32> -> vector<13x8xf32>
    %420 = arith.addf %414, %419 : vector<13x8xf32>
    %c0_520 = arith.constant 0 : index
    %c7_521 = arith.constant 7 : index
    %c0_522 = arith.constant 0 : index
    %c1_523 = arith.constant 1 : index
    %421 = vector.load %arg2[%c0_520, %c7_521, %c0_522, %c1_523] : memref<1x8x3x9xf32, #tpu.memory_space<vmem>>, vector<1x1x3x8xf32>
    %422 = vector.shape_cast %421 : vector<1x1x3x8xf32> to vector<3x8xf32>
    %c2_524 = arith.constant 2 : index
    %c0_525 = arith.constant 0 : index
    %c0_526 = arith.constant 0 : index
    %423 = vector.load %arg8[%c2_524, %c0_525, %c0_526] : memref<9x13x3xf32, #tpu.memory_space<vmem>>, vector<1x13x3xf32>
    %424 = vector.shape_cast %423 : vector<1x13x3xf32> to vector<13x3xf32>
    %cst_527 = arith.constant dense<0.000000e+00> : vector<13x8xf32>
    %425 = tpu.matmul %424, %422, %cst_527 {dimension_numbers = #tpu.dot_dimension_numbers<[1], [0], [0], [1], [0, 0, 1, 1], [], []>} : vector<13x3xf32>, vector<3x8xf32>, vector<13x8xf32> -> vector<13x8xf32>
    %426 = arith.addf %420, %425 : vector<13x8xf32>
    %c0_528 = arith.constant 0 : index
    %c7_529 = arith.constant 7 : index
    %c0_530 = arith.constant 0 : index
    %c0_531 = arith.constant 0 : index
    %427 = vector.load %arg4[%c0_528, %c7_529, %c0_530, %c0_531] : memref<1x8x3x9xf32, #tpu.memory_space<vmem>>, vector<1x1x3x8xf32>
    %428 = vector.shape_cast %427 : vector<1x1x3x8xf32> to vector<3x8xf32>
    %c3_532 = arith.constant 3 : index
    %c0_533 = arith.constant 0 : index
    %c0_534 = arith.constant 0 : index
    %429 = vector.load %arg8[%c3_532, %c0_533, %c0_534] : memref<9x13x3xf32, #tpu.memory_space<vmem>>, vector<1x13x3xf32>
    %430 = vector.shape_cast %429 : vector<1x13x3xf32> to vector<13x3xf32>
    %cst_535 = arith.constant dense<0.000000e+00> : vector<13x8xf32>
    %431 = tpu.matmul %430, %428, %cst_535 {dimension_numbers = #tpu.dot_dimension_numbers<[1], [0], [0], [1], [0, 0, 1, 1], [], []>} : vector<13x3xf32>, vector<3x8xf32>, vector<13x8xf32> -> vector<13x8xf32>
    %432 = arith.addf %426, %431 : vector<13x8xf32>
    %c0_536 = arith.constant 0 : index
    %c7_537 = arith.constant 7 : index
    %c0_538 = arith.constant 0 : index
    %c0_539 = arith.constant 0 : index
    %433 = vector.load %arg5[%c0_536, %c7_537, %c0_538, %c0_539] : memref<1x8x3x9xf32, #tpu.memory_space<vmem>>, vector<1x1x3x8xf32>
    %434 = vector.shape_cast %433 : vector<1x1x3x8xf32> to vector<3x8xf32>
    %c4_540 = arith.constant 4 : index
    %c0_541 = arith.constant 0 : index
    %c0_542 = arith.constant 0 : index
    %435 = vector.load %arg8[%c4_540, %c0_541, %c0_542] : memref<9x13x3xf32, #tpu.memory_space<vmem>>, vector<1x13x3xf32>
    %436 = vector.shape_cast %435 : vector<1x13x3xf32> to vector<13x3xf32>
    %cst_543 = arith.constant dense<0.000000e+00> : vector<13x8xf32>
    %437 = tpu.matmul %436, %434, %cst_543 {dimension_numbers = #tpu.dot_dimension_numbers<[1], [0], [0], [1], [0, 0, 1, 1], [], []>} : vector<13x3xf32>, vector<3x8xf32>, vector<13x8xf32> -> vector<13x8xf32>
    %438 = arith.addf %432, %437 : vector<13x8xf32>
    %c0_544 = arith.constant 0 : index
    %c7_545 = arith.constant 7 : index
    %c0_546 = arith.constant 0 : index
    %c1_547 = arith.constant 1 : index
    %439 = vector.load %arg4[%c0_544, %c7_545, %c0_546, %c1_547] : memref<1x8x3x9xf32, #tpu.memory_space<vmem>>, vector<1x1x3x8xf32>
    %440 = vector.shape_cast %439 : vector<1x1x3x8xf32> to vector<3x8xf32>
    %c5_548 = arith.constant 5 : index
    %c0_549 = arith.constant 0 : index
    %c0_550 = arith.constant 0 : index
    %441 = vector.load %arg8[%c5_548, %c0_549, %c0_550] : memref<9x13x3xf32, #tpu.memory_space<vmem>>, vector<1x13x3xf32>
    %442 = vector.shape_cast %441 : vector<1x13x3xf32> to vector<13x3xf32>
    %cst_551 = arith.constant dense<0.000000e+00> : vector<13x8xf32>
    %443 = tpu.matmul %442, %440, %cst_551 {dimension_numbers = #tpu.dot_dimension_numbers<[1], [0], [0], [1], [0, 0, 1, 1], [], []>} : vector<13x3xf32>, vector<3x8xf32>, vector<13x8xf32> -> vector<13x8xf32>
    %444 = arith.addf %438, %443 : vector<13x8xf32>
    %c0_552 = arith.constant 0 : index
    %c7_553 = arith.constant 7 : index
    %c0_554 = arith.constant 0 : index
    %c0_555 = arith.constant 0 : index
    %445 = vector.load %arg6[%c0_552, %c7_553, %c0_554, %c0_555] : memref<1x8x3x9xf32, #tpu.memory_space<vmem>>, vector<1x1x3x8xf32>
    %446 = vector.shape_cast %445 : vector<1x1x3x8xf32> to vector<3x8xf32>
    %c6_556 = arith.constant 6 : index
    %c0_557 = arith.constant 0 : index
    %c0_558 = arith.constant 0 : index
    %447 = vector.load %arg8[%c6_556, %c0_557, %c0_558] : memref<9x13x3xf32, #tpu.memory_space<vmem>>, vector<1x13x3xf32>
    %448 = vector.shape_cast %447 : vector<1x13x3xf32> to vector<13x3xf32>
    %cst_559 = arith.constant dense<0.000000e+00> : vector<13x8xf32>
    %449 = tpu.matmul %448, %446, %cst_559 {dimension_numbers = #tpu.dot_dimension_numbers<[1], [0], [0], [1], [0, 0, 1, 1], [], []>} : vector<13x3xf32>, vector<3x8xf32>, vector<13x8xf32> -> vector<13x8xf32>
    %450 = arith.addf %444, %449 : vector<13x8xf32>
    %c0_560 = arith.constant 0 : index
    %c7_561 = arith.constant 7 : index
    %c0_562 = arith.constant 0 : index
    %c0_563 = arith.constant 0 : index
    %451 = vector.load %arg7[%c0_560, %c7_561, %c0_562, %c0_563] : memref<1x8x3x9xf32, #tpu.memory_space<vmem>>, vector<1x1x3x8xf32>
    %452 = vector.shape_cast %451 : vector<1x1x3x8xf32> to vector<3x8xf32>
    %c7_564 = arith.constant 7 : index
    %c0_565 = arith.constant 0 : index
    %c0_566 = arith.constant 0 : index
    %453 = vector.load %arg8[%c7_564, %c0_565, %c0_566] : memref<9x13x3xf32, #tpu.memory_space<vmem>>, vector<1x13x3xf32>
    %454 = vector.shape_cast %453 : vector<1x13x3xf32> to vector<13x3xf32>
    %cst_567 = arith.constant dense<0.000000e+00> : vector<13x8xf32>
    %455 = tpu.matmul %454, %452, %cst_567 {dimension_numbers = #tpu.dot_dimension_numbers<[1], [0], [0], [1], [0, 0, 1, 1], [], []>} : vector<13x3xf32>, vector<3x8xf32>, vector<13x8xf32> -> vector<13x8xf32>
    %456 = arith.addf %450, %455 : vector<13x8xf32>
    %c0_568 = arith.constant 0 : index
    %c7_569 = arith.constant 7 : index
    %c0_570 = arith.constant 0 : index
    %c1_571 = arith.constant 1 : index
    %457 = vector.load %arg6[%c0_568, %c7_569, %c0_570, %c1_571] : memref<1x8x3x9xf32, #tpu.memory_space<vmem>>, vector<1x1x3x8xf32>
    %458 = vector.shape_cast %457 : vector<1x1x3x8xf32> to vector<3x8xf32>
    %c8_572 = arith.constant 8 : index
    %c0_573 = arith.constant 0 : index
    %c0_574 = arith.constant 0 : index
    %459 = vector.load %arg8[%c8_572, %c0_573, %c0_574] : memref<9x13x3xf32, #tpu.memory_space<vmem>>, vector<1x13x3xf32>
    %460 = vector.shape_cast %459 : vector<1x13x3xf32> to vector<13x3xf32>
    %cst_575 = arith.constant dense<0.000000e+00> : vector<13x8xf32>
    %461 = tpu.matmul %460, %458, %cst_575 {dimension_numbers = #tpu.dot_dimension_numbers<[1], [0], [0], [1], [0, 0, 1, 1], [], []>} : vector<13x3xf32>, vector<3x8xf32>, vector<13x8xf32> -> vector<13x8xf32>
    %462 = arith.addf %456, %461 : vector<13x8xf32>
    %463 = arith.addf %405, %462 : vector<13x8xf32>
    %464 = arith.mulf %462, %462 : vector<13x8xf32>
    %465 = arith.addf %407, %464 : vector<13x8xf32>
    %cst_576 = arith.constant dense<0.000000e+00> : vector<13xf32>
    %466 = vector.multi_reduction <add>, %463, %cst_576 [1] : vector<13x8xf32> to vector<13xf32>
    %467 = vector.shape_cast %466 : vector<13xf32> to vector<13x1xf32>
    %c0_577 = arith.constant 0 : index
    %c0_578 = arith.constant 0 : index
    %c0_579 = arith.constant 0 : index
    %c0_580 = arith.constant 0 : index
    %468 = vector.load %arg9[%c0_577, %c0_578, %c0_579, %c0_580] : memref<1x1x13x2xf32, #tpu.memory_space<vmem>>, vector<1x1x13x1xf32>
    %469 = vector.shape_cast %468 : vector<1x1x13x1xf32> to vector<13x1xf32>
    %470 = vector.shape_cast %467 : vector<13x1xf32> to vector<1x1x13x1xf32>
    tpu.vector_store %arg9[%c0_577, %c0_578, %c0_579, %c0_580], %470 {strides = array<i32>} : memref<1x1x13x2xf32, #tpu.memory_space<vmem>>, vector<1x1x13x1xf32>,
    %cst_581 = arith.constant dense<0.000000e+00> : vector<13xf32>
    %471 = vector.multi_reduction <add>, %465, %cst_581 [1] : vector<13x8xf32> to vector<13xf32>
    %472 = vector.shape_cast %471 : vector<13xf32> to vector<13x1xf32>
    %c0_582 = arith.constant 0 : index
    %c0_583 = arith.constant 0 : index
    %c0_584 = arith.constant 0 : index
    %c1_585 = arith.constant 1 : index
    %473 = vector.load %arg9[%c0_582, %c0_583, %c0_584, %c1_585] : memref<1x1x13x2xf32, #tpu.memory_space<vmem>>, vector<1x1x13x1xf32>
    %474 = vector.shape_cast %473 : vector<1x1x13x1xf32> to vector<13x1xf32>
    %475 = vector.shape_cast %472 : vector<13x1xf32> to vector<1x1x13x1xf32>
    tpu.vector_store %arg9[%c0_582, %c0_583, %c0_584, %c1_585], %475 {strides = array<i32>} : memref<1x1x13x2xf32, #tpu.memory_space<vmem>>, vector<1x1x13x1xf32>,
    return
  }
  func.func @transform_0(%arg0: i32, %arg1: i32) -> (i32, i32, i32, i32) {
    %c0_i32 = arith.constant 0 : i32
    %c0_i32_0 = arith.constant 0 : i32
    %c0_i32_1 = arith.constant 0 : i32
    return %arg0, %arg1, %c0_i32, %c0_i32_0 : i32, i32, i32, i32
  }
  func.func @transform_1(%arg0: i32, %arg1: i32) -> (i32, i32, i32, i32) {
    %c0_i32 = arith.constant 0 : i32
    %c0_i32_0 = arith.constant 0 : i32
    %c0_i32_1 = arith.constant 0 : i32
    return %arg0, %arg1, %c0_i32, %c0_i32_0 : i32, i32, i32, i32
  }
  func.func @transform_2(%arg0: i32, %arg1: i32) -> (i32, i32, i32, i32) {
    %c0_i32 = arith.constant 0 : i32
    %c0_i32_0 = arith.constant 0 : i32
    %c0_i32_1 = arith.constant 0 : i32
    return %arg0, %arg1, %c0_i32, %c0_i32_0 : i32, i32, i32, i32
  }
  func.func @transform_3(%arg0: i32, %arg1: i32) -> (i32, i32, i32, i32) {
    %c0_i32 = arith.constant 0 : i32
    %c0_i32_0 = arith.constant 0 : i32
    %c0_i32_1 = arith.constant 0 : i32
    return %arg0, %arg1, %c0_i32, %c0_i32_0 : i32, i32, i32, i32
  }
  func.func @transform_4(%arg0: i32, %arg1: i32) -> (i32, i32, i32, i32) {
    %c0_i32 = arith.constant 0 : i32
    %c0_i32_0 = arith.constant 0 : i32
    %c0_i32_1 = arith.constant 0 : i32
    return %arg0, %arg1, %c0_i32, %c0_i32_0 : i32, i32, i32, i32
  }
  func.func @transform_5(%arg0: i32, %arg1: i32) -> (i32, i32, i32, i32) {
    %c0_i32 = arith.constant 0 : i32
    %c0_i32_0 = arith.constant 0 : i32
    %c0_i32_1 = arith.constant 0 : i32
    return %arg0, %arg1, %c0_i32, %c0_i32_0 : i32, i32, i32, i32
  }
  func.func @transform_6(%arg0: i32, %arg1: i32) -> (i32, i32, i32) {
    %c0_i32 = arith.constant 0 : i32
    %c0_i32_0 = arith.constant 0 : i32
    %c0_i32_1 = arith.constant 0 : i32
    %c0_i32_2 = arith.constant 0 : i32
    return %c0_i32, %c0_i32_0, %c0_i32_1 : i32, i32, i32
  }
  func.func @transform_7(%arg0: i32, %arg1: i32) -> (i32, i32, i32, i32) {
    %c0_i32 = arith.constant 0 : i32
    %c0_i32_0 = arith.constant 0 : i32
    %c0_i32_1 = arith.constant 0 : i32
    return %arg0, %arg1, %c0_i32, %c0_i32_0 : i32, i32, i32, i32
  }
}

</mosaic_0001>

<bundles_post_ra>
// kernel: tpu_custom_call.1
= control target key start
LH: loop header
LB: loop body
LE: loop exit
PB: predicated region body
PF: predicated region fallthrough
CT: control target
= control target key end

     0   :  { %s3318_s24 = smov 0   ;;  %s3320_s25 = smov 0   ;;  %s4029_s0 = inlined_call_operand.vmem [shape: f32[2,8,3,9], index: 0, kind: input, shape index: {}]   ;;  %s4030_s1 = inlined_call_operand.vmem [shape: f32[2,8,3,9], index: 1, kind: input, shape index: {}]   ;;  %s4031_s2 = inlined_call_operand.vmem [shape: f32[2,8,3,9], index: 2, kind: input, shape index: {}]   ;;  %s4032_s3 = inlined_call_operand.vmem [shape: f32[2,8,3,9], index: 3, kind: input, shape index: {}]   ;;  %s4033_s4 = inlined_call_operand.vmem [shape: f32[2,8,3,9], index: 4, kind: input, shape index: {}]   ;;  %s4034_s5 = inlined_call_operand.vmem [shape: f32[2,8,3,9], index: 5, kind: input, shape index: {}]   ;;  %s4035_s6 = inlined_call_operand.vmem [shape: f32[9,13,3], index: 6, kind: input, shape index: {}]   ;;  %s4036_s7 = inlined_call_operand.vmem [shape: f32[2,1,13,2], index: 7, kind: output, shape index: {}]  }
   0x1   :  { %s3322_s26 = smov 0  }
   0x2 LB: > { %s29_s27 = sadd.s32 1, %s3271_s25  ;;  %p2930_p0 = scmp.ge.s32.totalorder %s3275_s26, 1  ;;  %s3275_s26 = sphi %s3322_s26, %s17_s26   ;;  %s3271_s25 = sphi %s3320_s25, %s4038_s25   ;;  %s3267_s24 = sphi %s3318_s24, %s4037_s24  }
   0x3   : > { %p31_p1 = scmp.ge.s32.totalorder %s29_s27, 2  ;;  %p343_p2 = scmp.lt.s32.totalorder %s3275_s26, 3 }
   0x5   : > { %s4040_s27 = smov (%p31_p1, %s29_s27), 0  ;;  %p344_p3 = pnand %p2930_p0, %p343_p2 }
   0x6   : > { %p429_p4 = scmp.lt.s32.totalorder (!%p344_p3), %s3267_s24, 1  ;;  %s3277_s20 = smov (!%p344_p3), 127  }
   0x7   : > { %347 = sbr.rel (%p344_p3) target bundleno = 670 (0x29e), region = 48 }
   0xc   : > { %s4042_s24 = smov (!%p429_p4, %s3267_s24), 1  ;;  %vm511_vm0 = vcmask 1042432   ;;  %v3369_v1 = vld [vmem:[%s4035_s6] sm:$0xff]  ;;  %v3384_v5 = vld [vmem:[%s4035_s6 + $0x10] sm:$0xff]  ;;  %vm504_vm1 = vcmask 23552   ;;  %vm2725_vm2 = vcmask 64512  }
   0xd   : > { %s3339_s28 = sshll.u32 %s4042_s24, 5  ;;  %v3436_v13 = vld [vmem:[%s4035_s6 + $0x18] sm:$0x1f]  ;;  %v3441_v14 = vld [vmem:[%s4035_s6 + $0x30] sm:$0xff]  ;;  %v3455_v16 = vld [vmem:[%s4035_s6 + $0x8] sm:$0x1f] }
   0xe   : > { %s3345_s8 = scalar_lea.vmem %s4029_s0, %s3339_s28  ;;  %s3351_s11 = scalar_lea.vmem %s4031_s2, %s3339_s28  ;;  %v3466_v19 = vld [vmem:[%s4035_s6 + $0x38] sm:$0x1f]  ;;  %v3471_v20 = vld [vmem:[%s4035_s6 + $0x40] sm:$0xff]  ;;  %v3485_v22 = vld [vmem:[%s4035_s6 + $0x48] sm:$0x1f]  ;;  %vm2729_vm3 = vcmask 61440  }
   0xf   : > { %v497_v0 = vld [vmem:[%s3345_s8] sm:$0x7]  ;;  %s3358_s14 = scalar_lea.vmem %s4033_s4, %s3339_s28  ;;  %s3364_s17 = scalar_lea.vmem %s4030_s1, %s3339_s28  ;;  %v3374_v3 = vld [vmem:[%s3351_s11 + $0x4] sm:$0x7]  ;;  %v3402_v9 = vld [vmem:[%s3345_s8 + $0x8] sm:$0x7] }
  0x10   : > { %573 = vrot.lane.b32.xlu0 %v497_v0, %s3277_s20  ;;  %v722_v2 = vld [vmem:[%s3358_s14] sm:$0x7]  ;;  %2950 = vmatpush.msk.msra.mxu1 %vm511_vm0, %v497_v0  ;;  %v2988_v7 = vld [vmem:[%s3345_s8 + $0x4] sm:$0x7]  ;;  %v3405_v10 = vld [vmem:[%s3351_s11 + $0x8] sm:$0x7]  ;;  %s3425_s30 = scalar_lea.vmem %s4032_s3, %s3339_s28  ;;  %s3431_s12 = scalar_lea.vmem %s4034_s5, %s3339_s28 }
  0x11   : > { %v608_v4 = vld [vmem:[%s3351_s11] sm:$0x7]  ;;  %801 = vrot.lane.b32.xlu1 %v722_v2, %s3277_s20  ;;  %987 = vrot.lane.b32.xlu2 %v3374_v3, %s3277_s20  ;;  %v3395_v8 = vld [vmem:[%s3358_s14 + $0x4] sm:$0x7]  ;;  %vm2733_vm4 = vcmask 7168   ;;  %vm2743_vm5 = vcmask 15368  }
  0x12   : > { %v500_v6 = vld [vmem:[%s3364_s17] sm:$0x7]  ;;  %2951 = vmatmul.msk.f32.vlgmr.msra.gmra.mxu1 %vm504_vm1, %v3369_v1  ;;  %2960 = vmatpush.msk.msra.mxu3 %vm511_vm0, %v608_v4  ;;  %v3408_v11 = vld [vmem:[%s3358_s14 + $0x8] sm:$0x7]  ;;  %v3417_v12 = vld [vmem:[%s3345_s8 + $0xc] sm:$0x7] }
  0x13   : > { %2947 = vmatpush.msk.msra.mxu0 %vm511_vm0, %v500_v6  ;;  %2961 = vmatmul.msk.f32.vlgmr.msra.gmra.mxu3 %vm504_vm1, %v3441_v14  ;;  %v3448_v15 = vld [vmem:[%s3351_s11 + $0xc] sm:$0x7]  ;;  %v646_v17 = vld [vmem:[%s3425_s30] sm:$0x7]  ;;  %v3478_v21 = vld [vmem:[%s3345_s8 + $0x10] sm:$0x7] }
  0x14   : > { %2948 = vmatmul.msk.f32.vlgmr.msra.gmra.mxu0 %vm504_vm1, %v3384_v5  ;;  %v760_v18 = vld [vmem:[%s3431_s12] sm:$0x7]  ;;  %v3490_v23 = vld [vmem:[%s4035_s6 + $0x70] sm:$0xff]  ;;  %v3499_v24 = vld [vmem:[%s4035_s6 + $0x78] sm:$0x1f]  ;;  %vm2735_vm6 = vcmask 4096  }
  0x15   : > { %2965 = vmatpush.msk.msrb.mxu0 %vm511_vm0, %v646_v17  ;;  %2980 = vmatpush.msk.msrb.mxu3 %vm511_vm0, %v760_v18  ;;  %v3502_v25 = vld [vmem:[%s3358_s14 + $0xc] sm:$0x7]  ;;  %v3511_v26 = vld [vmem:[%s4035_s6 + $0x20] sm:$0xff]  ;;  %v3523_v30 = vld [vmem:[%s3351_s11 + $0x10] sm:$0x7]  ;;  %vm2745_vm7 = vcmask 12296  }
  0x16   : > { %v3516_v28 = vld [vmem:[%s4035_s6 + $0x80] sm:$0xff]  ;;  %v3536_v31 = vld [vmem:[%s4035_s6 + $0x28] sm:$0x1f]  ;;  %v3541_v32 = vld [vmem:[%s4035_s6 + $0x50] sm:$0xff] }
  0x17   : > { %v2989_v34 = vld [vmem:[%s3364_s17 + $0x4] sm:$0x7]  ;;  %v3548_v36 = vld [vmem:[%s4035_s6 + $0x88] sm:$0x1f]  ;;  %v3574_v39 = vld [vmem:[%s4035_s6 + $0x58] sm:$0x1f] }
  0x18   : > { %687 = vrot.lane.b32.xlu0 %v608_v4, %s3277_s20  ;;  %v3003_v37 = vld [vmem:[%s3425_s30 + $0x4] sm:$0x7]  ;;  %v3581_v41 = vld [vmem:[%s3345_s8 + $0x14] sm:$0x7]  ;;  %v3595_v43 = vld [vmem:[%s4035_s6 + $0x68] sm:$0x1f] }
  0x19   : > { %898 = vrot.lane.b32.xlu1 %v2988_v7, %s3277_s20  ;;  %1076 = vrot.lane.b32.xlu2 %v3395_v8, %s3277_s20  ;;  %v3569_v38 = vld [vmem:[%s4035_s6 + $0x60] sm:$0xff]  ;;  %v3602_v45 = vld [vmem:[%s3351_s11 + $0x14] sm:$0x7] }
  0x1a   : > { %2952 = vmatmul.msk.f32.gmra.mxu1 %vm504_vm1, %v3455_v16  ;;  %v3014_v42 = vld [vmem:[%s3431_s12 + $0x4] sm:$0x7]  ;;  %v3022_v46 = vld [vmem:[%s3364_s17 + $0x8] sm:$0x7]  ;;  %v3630_v49 = vld [vmem:[%s3358_s14 + $0x10] sm:$0x7] }
  0x1b   : > { %2962 = vmatmul.msk.f32.gmra.mxu3 %vm504_vm1, %v3466_v19  ;;  %v3036_v50 = vld [vmem:[%s3425_s30 + $0x8] sm:$0x7]  ;;  %v3055_v51 = vld [vmem:[%s3364_s17 + $0xc] sm:$0x7]  ;;  %v3669_v54 = vld [vmem:[%s3351_s11 + $0x18] sm:$0x7] }
  0x1c   : > { %2949 = vmatmul.msk.f32.gmra.mxu0 %vm504_vm1, %v3436_v13  ;;  %v3047_v52 = vld [vmem:[%s3431_s12 + $0x8] sm:$0x7]  ;;  %v3672_v55 = vld [vmem:[%s3345_s8 + $0x18] sm:$0x7]  ;;  %v3069_v56 = vld [vmem:[%s3425_s30 + $0xc] sm:$0x7] }
  0x1d   : > { %v3690_v58 = vld [vmem:[%s3358_s14 + $0x14] sm:$0x7]  ;;  %v3080_v62 = vld [vmem:[%s3431_s12 + $0xc] sm:$0x7]  ;;  %v3736_v0 = vld [vmem:[%s3345_s8 + $0x1c] sm:$0x7] }
  0x1e   : > { %v3747_v4 = vld [vmem:[%s3358_s14 + $0x18] sm:$0x7]  ;;  %s3227_s8 = sshll.u32 %s4042_s24, 4 }
  0x20   : > { %1167 = vrot.lane.b32.xlu0 %v3402_v9, %s3277_s20 }
  0x21   : > { %1256 = vrot.lane.b32.xlu1 %v3405_v10, %s3277_s20  ;;  %1345 = vrot.lane.b32.xlu2 %v3408_v11, %s3277_s20 }
  0x23   : > { %2981 = vmatmul.msk.f32.vlgmr.msrb.gmra.mxu3 %vm504_vm1, %v3490_v23 }
  0x24   : > { %2966 = vmatmul.msk.f32.vlgmr.msrb.gmra.mxu0 %vm504_vm1, %v3471_v20 }
  0x28   : > { %1436 = vrot.lane.b32.xlu0 %v3417_v12, %s3277_s20 }
  0x29   : > { %1525 = vrot.lane.b32.xlu1 %v3448_v15, %s3277_s20  ;;  %1614 = vrot.lane.b32.xlu2 %v3502_v25, %s3277_s20 }
  0x2b   : > { %2982 = vmatmul.msk.f32.gmra.mxu3 %vm504_vm1, %v3499_v24 }
  0x2c   : > { %2967 = vmatmul.msk.f32.gmra.mxu0 %vm504_vm1, %v3485_v22 }
  0x30   : > { %1705 = vrot.lane.b32.xlu0 %v3478_v21, %s3277_s20 }
  0x31   : > { %1794 = vrot.lane.b32.xlu1 %v3523_v30, %s3277_s20  ;;  %1883 = vrot.lane.b32.xlu2 %v3630_v49, %s3277_s20 }
  0x38   : > { %1974 = vrot.lane.b32.xlu0 %v3581_v41, %s3277_s20 }
  0x39   : > { %2063 = vrot.lane.b32.xlu1 %v3602_v45, %s3277_s20  ;;  %2152 = vrot.lane.b32.xlu2 %v3690_v58, %s3277_s20 }
  0x40   : > { %2243 = vrot.lane.b32.xlu0 %v3672_v55, %s3277_s20 }
  0x41   : > { %2332 = vrot.lane.b32.xlu1 %v3669_v54, %s3277_s20  ;;  %2421 = vrot.lane.b32.xlu2 %v3747_v4, %s3277_s20 }
  0x48   : > { %2512 = vrot.lane.b32.xlu0 %v3736_v0, %s3277_s20 }
  0x6b   : > { %v988_v40 = vpop.permute.xlu2 %987 }
  0x73   : > { %v1077_v44 = vpop.permute.xlu2 %1076 }
  0x7b   : > { %v1346_v53 = vpop.permute.xlu2 %1345 }
  0x82   : > { %v574_v27 = vpop.permute.xlu0 %573 }
  0x83   : > { %2955 = vmatpush.msk.msra.mxu2 %vm511_vm0, %v574_v27  ;;  %v802_v29 = vpop.permute.xlu1 %801  ;;  %v1615_v59 = vpop.permute.xlu2 %1614 }
  0x84   : > { %2956 = vmatmul.msk.f32.vlgmr.msra.gmra.mxu2 %vm504_vm1, %v3511_v26  ;;  %2985 = vmatpush.msk.msra.mxu0 %vm511_vm0, %v802_v29 }
  0x85   : > { %2975 = vmatpush.msk.msrb.mxu2 %vm511_vm0, %v722_v2  ;;  %2986 = vmatmul.msk.f32.vlgmr.msra.gmra.mxu0 %vm504_vm1, %v3516_v28 }
  0x86   : > { %3000 = vmatpush.msk.msrb.mxu0 %vm511_vm0, %v3374_v3  ;;  %v3088_v3 = vld [vmem:[%s3364_s17 + $0x10] sm:$0x7] }
  0x87   : > { %2993 = vmatpush.msk.msra.mxu2 %vm511_vm0, %v2988_v7 }
  0x88   : > { %3015 = vmatpush.msk.msra.mxu0 %vm511_vm0, %v3014_v42 }
  0x8a   : > { %v688_v33 = vpop.permute.xlu0 %687 }
  0x8b   : > { %2970 = vmatpush.msk.msrb.mxu1 %vm511_vm0, %v688_v33  ;;  %v899_v35 = vpop.permute.xlu1 %898 }
  0x8c   : > { %2957 = vmatmul.msk.f32.gmra.mxu2 %vm504_vm1, %v3536_v31  ;;  %2971 = vmatmul.msk.f32.vlgmr.msrb.gmra.mxu1 %vm504_vm1, %v3541_v32 }
  0x8d   : > { %2996 = vmatpush.msk.msra.mxu3 %vm511_vm0, %v899_v35  ;;  %2990 = vmatpush.msk.msra.mxu1 %vm511_vm0, %v2989_v34  ;;  %v1884_v34 = vpop.permute.xlu2 %1883 }
  0x8e   : > { %2987 = vmatmul.msk.f32.gmra.mxu0 %vm504_vm1, %v3548_v36  ;;  %2997 = vmatmul.msk.f32.vlgmr.msra.gmra.mxu3 %vm504_vm1, %v3511_v26 }
  0x8f   : > { %3011 = vmatpush.msk.msrb.mxu3 %vm511_vm0, %v3395_v8  ;;  %3004 = vmatpush.msk.msrb.mxu1 %vm511_vm0, %v3003_v37 }
  0x91   : > { %3026 = vmatpush.msk.msra.mxu3 %vm511_vm0, %v3402_v9  ;;  %v532_v61 = vpop.f32.mrf.mxu0  ;;  %v564_v9 = vpop.f32.mrf.mxu1 }
  0x92   : > { %v1168_v48 = vpop.permute.xlu0 %1167  ;;  %v565_v27 = vadd.f32 %v564_v9, %v532_v61 }
  0x93   : > { %v1257_v47 = vpop.permute.xlu1 %1256 }
  0x94   : > { %2976 = vmatmul.msk.f32.vlgmr.msrb.gmra.mxu2 %vm504_vm1, %v3569_v38  ;;  %2972 = vmatmul.msk.f32.gmra.mxu1 %vm504_vm1, %v3574_v39 }
  0x95   : > { %3007 = vmatpush.msk.msrb.mxu2 %vm511_vm0, %v988_v40 }
  0x96   : > { %2998 = vmatmul.msk.f32.gmra.mxu3 %vm504_vm1, %v3536_v31  ;;  %3001 = vmatmul.msk.f32.vlgmr.msrb.gmra.mxu0 %vm504_vm1, %v3441_v14  ;;  %v638_v2 = vpop.f32.mrf.mxu3 }
  0x97   : > { %3029 = vmatpush.msk.msrb.mxu0 %vm511_vm0, %v1168_v48 }
  0x99   : > { %v3728_v63 = vpop.f32.mrf.mxu0 }
  0x9a   : > { %v1437_v57 = vpop.permute.xlu0 %1436 }
  0x9b   : > { %v1526_v60 = vpop.permute.xlu1 %1525 }
  0x9c   : > { %2977 = vmatmul.msk.f32.gmra.mxu2 %vm504_vm1, %v3595_v43  ;;  %2991 = vmatmul.msk.f32.vlgmr.msra.gmra.mxu1 %vm504_vm1, %v3384_v5 }
  0x9d   : > { %3018 = vmatpush.msk.msra.mxu1 %vm511_vm0, %v1077_v44 }
  0x9e   : > { %3002 = vmatmul.msk.f32.gmra.mxu0 %vm504_vm1, %v3466_v19  ;;  %3012 = vmatmul.msk.f32.vlgmr.msrb.gmra.mxu3 %vm504_vm1, %v3569_v38  ;;  %v641_v8 = vpop.f32.mrf.mxu3 }
  0x9f   : > { %3040 = vmatpush.msk.msrb.mxu3 %vm511_vm0, %v1257_v47 }
  0xa1   : > { %v676_v6 = vpop.f32.mrf.mxu0 }
  0xa2   : > { %v1706_v7 = vpop.permute.xlu0 %1705 }
  0xa3   : > { %v1795_v17 = vpop.permute.xlu1 %1794 }
  0xa4   : > { %2994 = vmatmul.msk.f32.vlgmr.msra.gmra.mxu2 %vm504_vm1, %v3369_v1  ;;  %2992 = vmatmul.msk.f32.gmra.mxu1 %vm504_vm1, %v3436_v13 }
  0xa5   : > { %3023 = vmatpush.msk.msra.mxu2 %vm511_vm0, %v3022_v46  ;;  %v3121_v46 = vld [vmem:[%s3364_s17 + $0x14] sm:$0x7] }
  0xa6   : > { %3013 = vmatmul.msk.f32.gmra.mxu3 %vm504_vm1, %v3595_v43  ;;  %3016 = vmatmul.msk.f32.vlgmr.msra.gmra.mxu0 %vm504_vm1, %v3490_v23  ;;  %v790_v18 = vpop.f32.mrf.mxu3 }
  0xa7   : > { %3044 = vmatpush.msk.msra.mxu0 %vm511_vm0, %v3408_v11 }
  0xa9   : > { %v679_v11 = vpop.f32.mrf.mxu0 }
  0xaa   : > { %v1975_v35 = vpop.permute.xlu0 %1974 }
  0xac   : > { %2995 = vmatmul.msk.f32.gmra.mxu2 %vm504_vm1, %v3455_v16  ;;  %3005 = vmatmul.msk.f32.vlgmr.msrb.gmra.mxu1 %vm504_vm1, %v3471_v20 }
  0xad   : > { %3033 = vmatpush.msk.msrb.mxu1 %vm511_vm0, %v3405_v10  ;;  %v3767_v10 = vld [vmem:[%s3351_s11 + $0x1c] sm:$0x7] }
  0xae   : > { %3017 = vmatmul.msk.f32.gmra.mxu0 %vm504_vm1, %v3499_v24  ;;  %3027 = vmatmul.msk.f32.vlgmr.msra.gmra.mxu3 %vm504_vm1, %v3369_v1 }
  0xaf   : > { %3056 = vmatpush.msk.msra.mxu3 %vm511_vm0, %v3055_v51  ;;  %2601 = vrot.lane.b32.xlu1 %v3767_v10, %s3277_s20 }
  0xb4   : > { %3008 = vmatmul.msk.f32.vlgmr.msrb.gmra.mxu2 %vm504_vm1, %v3541_v32  ;;  %3006 = vmatmul.msk.f32.gmra.mxu1 %vm504_vm1, %v3485_v22 }
  0xb5   : > { %3037 = vmatpush.msk.msrb.mxu2 %vm511_vm0, %v3036_v50 }
  0xb6   : > { %3028 = vmatmul.msk.f32.gmra.mxu3 %vm504_vm1, %v3455_v16  ;;  %3030 = vmatmul.msk.f32.vlgmr.msrb.gmra.mxu0 %vm504_vm1, %v3511_v26 }
  0xb7   : > { %3059 = vmatpush.msk.msrb.mxu0 %vm511_vm0, %v3417_v12  ;;  %v3102_v12 = vld [vmem:[%s3425_s30 + $0x10] sm:$0x7] }
  0xbc   : > { %3009 = vmatmul.msk.f32.gmra.mxu2 %vm504_vm1, %v3574_v39  ;;  %3019 = vmatmul.msk.f32.vlgmr.msra.gmra.mxu1 %vm504_vm1, %v3516_v28 }
  0xbd   : > { %3048 = vmatpush.msk.msra.mxu1 %vm511_vm0, %v3047_v52 }
  0xbe   : > { %3031 = vmatmul.msk.f32.gmra.mxu0 %vm504_vm1, %v3536_v31  ;;  %3041 = vmatmul.msk.f32.vlgmr.msrb.gmra.mxu3 %vm504_vm1, %v3541_v32 }
  0xbf   : > { %3070 = vmatpush.msk.msrb.mxu3 %vm511_vm0, %v3069_v56 }
  0xc4   : > { %3024 = vmatmul.msk.f32.vlgmr.msra.gmra.mxu2 %vm504_vm1, %v3384_v5  ;;  %3020 = vmatmul.msk.f32.gmra.mxu1 %vm504_vm1, %v3548_v36 }
  0xc5   : > { %3051 = vmatpush.msk.msra.mxu2 %vm511_vm0, %v1346_v53 }
  0xc6   : > { %3042 = vmatmul.msk.f32.gmra.mxu3 %vm504_vm1, %v3574_v39  ;;  %3045 = vmatmul.msk.f32.vlgmr.msra.gmra.mxu0 %vm504_vm1, %v3569_v38 }
  0xc7   : > { %3073 = vmatpush.msk.msra.mxu0 %vm511_vm0, %v1526_v60 }
  0xcc   : > { %3025 = vmatmul.msk.f32.gmra.mxu2 %vm504_vm1, %v3436_v13  ;;  %3034 = vmatmul.msk.f32.vlgmr.msrb.gmra.mxu1 %vm504_vm1, %v3441_v14 }
  0xcd   : > { %3062 = vmatpush.msk.msrb.mxu1 %vm511_vm0, %v1437_v57 }
  0xce   : > { %3057 = vmatmul.msk.f32.vlgmr.msra.gmra.mxu3 %vm504_vm1, %v3384_v5  ;;  %3046 = vmatmul.msk.f32.gmra.mxu0 %vm504_vm1, %v3595_v43 }
  0xcf   : > { %3084 = vmatpush.msk.msra.mxu3 %vm511_vm0, %v1615_v59 }
  0xd4   : > { %3038 = vmatmul.msk.f32.vlgmr.msrb.gmra.mxu2 %vm504_vm1, %v3471_v20  ;;  %3035 = vmatmul.msk.f32.gmra.mxu1 %vm504_vm1, %v3466_v19 }
  0xd5   : > { %3066 = vmatpush.msk.msrb.mxu2 %vm511_vm0, %v3448_v15  ;;  %v3113_v15 = vld [vmem:[%s3431_s12 + $0x10] sm:$0x7] }
  0xd6   : > { %3058 = vmatmul.msk.f32.gmra.mxu3 %vm504_vm1, %v3436_v13  ;;  %3060 = vmatmul.msk.f32.vlgmr.msrb.gmra.mxu0 %vm504_vm1, %v3369_v1 }
  0xd7   : > { %3089 = vmatpush.msk.msrb.mxu0 %vm511_vm0, %v3088_v3 }
  0xdc   : > { %3039 = vmatmul.msk.f32.gmra.mxu2 %vm504_vm1, %v3485_v22  ;;  %3049 = vmatmul.msk.f32.vlgmr.msra.gmra.mxu1 %vm504_vm1, %v3490_v23 }
  0xdd   : > { %3077 = vmatpush.msk.msra.mxu1 %vm511_vm0, %v3502_v25 }
  0xde   : > { %3061 = vmatmul.msk.f32.gmra.mxu0 %vm504_vm1, %v3455_v16  ;;  %3071 = vmatmul.msk.f32.vlgmr.msrb.gmra.mxu3 %vm504_vm1, %v3471_v20 }
  0xdf   : > { %3099 = vmatpush.msk.msrb.mxu3 %vm511_vm0, %v3523_v30  ;;  %v793_v30 = vpop.f32.mrf.mxu3 }
  0xe4   : > { %3052 = vmatmul.msk.f32.vlgmr.msra.gmra.mxu2 %vm504_vm1, %v3516_v28  ;;  %3050 = vmatmul.msk.f32.gmra.mxu1 %vm504_vm1, %v3499_v24 }
  0xe5   : > { %3081 = vmatpush.msk.msra.mxu2 %vm511_vm0, %v3080_v62 }
  0xe6   : > { %3072 = vmatmul.msk.f32.gmra.mxu3 %vm504_vm1, %v3485_v22  ;;  %3074 = vmatmul.msk.f32.vlgmr.msra.gmra.mxu0 %vm504_vm1, %v3541_v32 }
  0xe7   : > { %3103 = vmatpush.msk.msra.mxu0 %vm511_vm0, %v3102_v12  ;;  %v2064_v12 = vpop.permute.xlu1 %2063 }
  0xec   : > { %3053 = vmatmul.msk.f32.gmra.mxu2 %vm504_vm1, %v3548_v36  ;;  %3063 = vmatmul.msk.f32.vlgmr.msrb.gmra.mxu1 %vm504_vm1, %v3511_v26 }
  0xed   : > { %3092 = vmatpush.msk.msrb.mxu1 %vm511_vm0, %v3478_v21  ;;  %v567_v21 = vpop.f32.mrf.mxu1 }
  0xee   : > { %3075 = vmatmul.msk.f32.gmra.mxu0 %vm504_vm1, %v3574_v39  ;;  %3085 = vmatmul.msk.f32.vlgmr.msra.gmra.mxu3 %vm504_vm1, %v3516_v28  ;;  %v568_v47 = vadd.f32 %v567_v21, %v3728_v63 }
  0xef   : > { %3114 = vmatpush.msk.msra.mxu3 %vm511_vm0, %v3113_v15 }
  0xf4   : > { %3067 = vmatmul.msk.f32.vlgmr.msrb.gmra.mxu2 %vm504_vm1, %v3441_v14  ;;  %3064 = vmatmul.msk.f32.gmra.mxu1 %vm504_vm1, %v3536_v31 }
  0xf5   : > { %3095 = vmatpush.msk.msrb.mxu2 %vm511_vm0, %v1706_v7 }
  0xf6   : > { %3086 = vmatmul.msk.f32.gmra.mxu3 %vm504_vm1, %v3548_v36  ;;  %3090 = vmatmul.msk.f32.vlgmr.msrb.gmra.mxu0 %vm504_vm1, %v3384_v5 }
  0xf7   : > { %3117 = vmatpush.msk.msrb.mxu0 %vm511_vm0, %v1884_v34 }
  0xfc   : > { %3068 = vmatmul.msk.f32.gmra.mxu2 %vm504_vm1, %v3466_v19  ;;  %3078 = vmatmul.msk.f32.vlgmr.msra.gmra.mxu1 %vm504_vm1, %v3569_v38 }
  0xfd   : > { %3106 = vmatpush.msk.msra.mxu1 %vm511_vm0, %v1795_v17 }
  0xfe   : > { %3091 = vmatmul.msk.f32.gmra.mxu0 %vm504_vm1, %v3436_v13  ;;  %3100 = vmatmul.msk.f32.vlgmr.msrb.gmra.mxu3 %vm504_vm1, %v3441_v14 }
  0xff   : > { %3128 = vmatpush.msk.msrb.mxu3 %vm511_vm0, %v1975_v35 }
 0x102   : > { %v828_v25 = vpop.f32.mrf.mxu0 }
 0x104   : > { %3082 = vmatmul.msk.f32.vlgmr.msra.gmra.mxu2 %vm504_vm1, %v3490_v23  ;;  %3079 = vmatmul.msk.f32.gmra.mxu1 %vm504_vm1, %v3595_v43 }
 0x105   : > { %3110 = vmatpush.msk.msra.mxu2 %vm511_vm0, %v3630_v49 }
 0x106   : > { %3101 = vmatmul.msk.f32.gmra.mxu3 %vm504_vm1, %v3466_v19  ;;  %3104 = vmatmul.msk.f32.vlgmr.msra.gmra.mxu0 %vm504_vm1, %v3471_v20 }
 0x107   : > { %v600_v29 = vpop.f32.mrf.mxu2  ;;  %3132 = vmatpush.msk.msra.mxu0 %vm511_vm0, %v3602_v45  ;;  %v3810_v45 = vld [vmem:[%s3358_s14 + $0x1c] sm:$0x7] }
 0x108   : > { %v606_v33 = vadd.f32 %v600_v29, %v565_v27  ;;  %2690 = vrot.lane.b32.xlu2 %v3810_v45, %s3277_s20  ;;  %v3146_v29 = vld [vmem:[%s3431_s12 + $0x14] sm:$0x7] }
 0x109   : > { %v714_v37 = vpop.f32.mrf.mxu1 }
 0x10a   : > { %v644_v40 = vadd.f32 %v638_v2, %v606_v33 }
 0x10b   : > { %v831_v42 = vpop.f32.mrf.mxu0 }
 0x10c   : > { %v682_v44 = vadd.f32 %v676_v6, %v644_v40  ;;  %3083 = vmatmul.msk.f32.gmra.mxu2 %vm504_vm1, %v3499_v24  ;;  %3093 = vmatmul.msk.f32.vlgmr.msrb.gmra.mxu1 %vm504_vm1, %v3369_v1 }
 0x10d   : > { %3122 = vmatpush.msk.msrb.mxu1 %vm511_vm0, %v3121_v46 }
 0x10e   : > { %v720_v48 = vadd.f32 %v714_v37, %v682_v44  ;;  %3105 = vmatmul.msk.f32.gmra.mxu0 %vm504_vm1, %v3485_v22  ;;  %3115 = vmatmul.msk.f32.vlgmr.msra.gmra.mxu3 %vm504_vm1, %v3490_v23 }
 0x10f   : > { %v603_v49 = vpop.f32.mrf.mxu2  ;;  %3143 = vmatpush.msk.msra.mxu3 %vm511_vm0, %v3690_v58 }
 0x110   : > { %v607_v50 = vadd.f32 %v603_v49, %v568_v47  ;;  %v3154_v47 = vld [vmem:[%s3364_s17 + $0x18] sm:$0x7] }
 0x111   : > { %v717_v51 = vpop.f32.mrf.mxu1  ;;  %v919_v52 = vpop.f32.mrf.mxu3 }
 0x112   : > { %v645_v53 = vadd.f32 %v641_v8, %v607_v50 }
 0x113   : > { %v949_v56 = vpop.f32.mrf.mxu0 }
 0x114   : > { %v683_v57 = vadd.f32 %v679_v11, %v645_v53  ;;  %3096 = vmatmul.msk.f32.vlgmr.msrb.gmra.mxu2 %vm504_vm1, %v3511_v26  ;;  %3094 = vmatmul.msk.f32.gmra.mxu1 %vm504_vm1, %v3455_v16  ;;  %v2333_v53 = vpop.permute.xlu1 %2332 }
 0x115   : > { %3125 = vmatpush.msk.msrb.mxu2 %vm511_vm0, %v3581_v41  ;;  %v3135_v41 = vld [vmem:[%s3425_s30 + $0x14] sm:$0x7] }
 0x116   : > { %v721_v59 = vadd.f32 %v717_v51, %v683_v57  ;;  %3116 = vmatmul.msk.f32.gmra.mxu3 %vm504_vm1, %v3499_v24  ;;  %3118 = vmatmul.msk.f32.vlgmr.msrb.gmra.mxu0 %vm504_vm1, %v3516_v28 }
 0x117   : > { %v752_v58 = vpop.f32.mrf.mxu2  ;;  %3147 = vmatpush.msk.msrb.mxu0 %vm511_vm0, %v3146_v29 }
 0x118   : > { %v758_v60 = vadd.f32 %v752_v58, %v720_v48  ;;  %v2244_v58 = vpop.permute.xlu0 %2243 }
 0x119   : > { %v866_v61 = vpop.f32.mrf.mxu1  ;;  %v922_v62 = vpop.f32.mrf.mxu3 }
 0x11a   : > { %v796_v63 = vadd.f32 %v790_v18, %v758_v60 }
 0x11b   : > { %v952_v2 = vpop.f32.mrf.mxu0 }
 0x11c   : > { %v3826_v3 = vadd.f32 %v828_v25, %v796_v63  ;;  %3097 = vmatmul.msk.f32.gmra.mxu2 %vm504_vm1, %v3536_v31  ;;  %3107 = vmatmul.msk.f32.vlgmr.msra.gmra.mxu1 %vm504_vm1, %v3541_v32 }
 0x11d   : > { %3136 = vmatpush.msk.msra.mxu1 %vm511_vm0, %v3135_v41 }
 0x11e   : > { %3119 = vmatmul.msk.f32.gmra.mxu0 %vm504_vm1, %v3548_v36  ;;  %3129 = vmatmul.msk.f32.vlgmr.msrb.gmra.mxu3 %vm504_vm1, %v3511_v26 }
 0x11f   : > { %v755_v6 = vpop.f32.mrf.mxu2  ;;  %3158 = vmatpush.msk.msrb.mxu3 %vm511_vm0, %v3672_v55 }
 0x120   : > { %v759_v7 = vadd.f32 %v755_v6, %v721_v59 }
 0x121   : > { %v869_v8 = vpop.f32.mrf.mxu1  ;;  %v1038_v9 = vpop.f32.mrf.mxu3 }
 0x122   : > { %v797_v11 = vadd.f32 %v793_v30, %v759_v7  ;;  %v2153_v30 = vpop.permute.xlu2 %2152 }
 0x123   : > { %v1068_v15 = vpop.f32.mrf.mxu0 }
 0x124   : > { %v3840_v17 = vadd.f32 %v831_v42, %v797_v11  ;;  %3111 = vmatmul.msk.f32.vlgmr.msra.gmra.mxu2 %vm504_vm1, %v3569_v38  ;;  %3108 = vmatmul.msk.f32.gmra.mxu1 %vm504_vm1, %v3574_v39  ;;  %v3168_v11 = vld [vmem:[%s3425_s30 + $0x18] sm:$0x7] }
 0x125   : > { %3139 = vmatpush.msk.msra.mxu2 %vm511_vm0, %v2064_v12 }
 0x126   : > { %3130 = vmatmul.msk.f32.gmra.mxu3 %vm504_vm1, %v3536_v31  ;;  %3133 = vmatmul.msk.f32.vlgmr.msra.gmra.mxu0 %vm504_vm1, %v3441_v14 }
 0x127   : > { %v892_v55 = vpop.f32.mrf.mxu2  ;;  %3161 = vmatpush.msk.msra.mxu0 %vm511_vm0, %v2244_v58  ;;  %v3201_v58 = vld [vmem:[%s3425_s30 + $0x1c] sm:$0x7] }
 0x128   : > { %v893_v18 = vadd.f32 %v892_v55, %v866_v61 }
 0x129   : > { %v979_v21 = vpop.f32.mrf.mxu1  ;;  %v1041_v25 = vpop.f32.mrf.mxu3 }
 0x12a   : > { %v925_v27 = vadd.f32 %v919_v52, %v893_v18  ;;  %v839_v18 = vmul.f32 %v3840_v17, %v3840_v17 }
 0x12b   : > { %v1071_v33 = vpop.f32.mrf.mxu0 }
 0x12c   : > { %v955_v34 = vadd.f32 %v949_v56, %v925_v27  ;;  %3112 = vmatmul.msk.f32.gmra.mxu2 %vm504_vm1, %v3595_v43  ;;  %3123 = vmatmul.msk.f32.vlgmr.msrb.gmra.mxu1 %vm504_vm1, %v3384_v5 }
 0x12d   : > { %3150 = vmatpush.msk.msrb.mxu1 %vm511_vm0, %v2153_v30 }
 0x12e   : > { %v985_v35 = vadd.f32 %v979_v21, %v955_v34  ;;  %3134 = vmatmul.msk.f32.gmra.mxu0 %vm504_vm1, %v3466_v19  ;;  %3144 = vmatmul.msk.f32.vlgmr.msra.gmra.mxu3 %vm504_vm1, %v3569_v38 }
 0x12f   : > { %v895_v37 = vpop.f32.mrf.mxu2  ;;  %3172 = vmatpush.msk.msra.mxu3 %vm511_vm0, %v2333_v53 }
 0x130   : > { %v896_v40 = vadd.f32 %v895_v37, %v869_v8 }
 0x131   : > { %v982_v42 = vpop.f32.mrf.mxu1  ;;  %v1161_v44 = vpop.f32.mrf.mxu3 }
 0x132   : > { %v926_v46 = vadd.f32 %v922_v62, %v896_v40  ;;  %v3179_v40 = vld [vmem:[%s3431_s12 + $0x18] sm:$0x7] }
 0x133   : > { %v1188_v48 = vpop.f32.mrf.mxu0 }
 0x134   : > { %v956_v49 = vadd.f32 %v952_v2, %v926_v46  ;;  %3126 = vmatmul.msk.f32.vlgmr.msrb.gmra.mxu2 %vm504_vm1, %v3369_v1  ;;  %3124 = vmatmul.msk.f32.gmra.mxu1 %vm504_vm1, %v3436_v13  ;;  %v838_v2 = vmul.f32 %v3826_v3, %v3826_v3 }
 0x135   : > { %3155 = vmatpush.msk.msrb.mxu2 %vm511_vm0, %v3154_v47 }
 0x136   : > { %v986_v50 = vadd.f32 %v982_v42, %v956_v49  ;;  %3145 = vmatmul.msk.f32.gmra.mxu3 %vm504_vm1, %v3595_v43  ;;  %3148 = vmatmul.msk.f32.vlgmr.msrb.gmra.mxu0 %vm504_vm1, %v3490_v23 }
 0x137   : > { %v1008_v51 = vpop.f32.mrf.mxu2  ;;  %3176 = vmatpush.msk.msrb.mxu0 %vm511_vm0, %v3747_v4 }
 0x138   : > { %v1014_v52 = vadd.f32 %v1008_v51, %v985_v35 }
 0x139   : > { %v1097_v56 = vpop.f32.mrf.mxu1  ;;  %v1164_v57 = vpop.f32.mrf.mxu3 }
 0x13a   : > { %v1044_v59 = vadd.f32 %v1038_v9, %v1014_v52 }
 0x13b   : > { %v1191_v60 = vpop.f32.mrf.mxu0 }
 0x13c   : > { %v1074_v61 = vadd.f32 %v1068_v15, %v1044_v59  ;;  %3127 = vmatmul.msk.f32.gmra.mxu2 %vm504_vm1, %v3455_v16  ;;  %3137 = vmatmul.msk.f32.vlgmr.msra.gmra.mxu1 %vm504_vm1, %v3471_v20 }
 0x13d   : > { %3165 = vmatpush.msk.msra.mxu1 %vm511_vm0, %v3669_v54 }
 0x13e   : > { %v1103_v62 = vadd.f32 %v1097_v56, %v1074_v61  ;;  %3149 = vmatmul.msk.f32.gmra.mxu0 %vm504_vm1, %v3499_v24  ;;  %3159 = vmatmul.msk.f32.vlgmr.msrb.gmra.mxu3 %vm504_vm1, %v3369_v1  ;;  %v2513_v61 = vpop.permute.xlu0 %2512 }
 0x13f   : > { %v1011_v63 = vpop.f32.mrf.mxu2 }
 0x140   : > { %v3889_v41 = vadd.f32 %v1103_v62, %v3826_v3  ;;  %v1107_v6 = vmul.f32 %v1103_v62, %v1103_v62  ;;  %v1015_v7 = vadd.f32 %v1011_v63, %v986_v50 }
 0x141   : > { %v1100_v54 = vpop.f32.mrf.mxu1  ;;  %v1277_v8 = vpop.f32.mrf.mxu3 }
 0x142   : > { %v3891_v9 = vadd.f32 %v1107_v6, %v838_v2  ;;  %v1045_v4 = vadd.f32 %v1041_v25, %v1015_v7 }
 0x143   : > { %v1307_v12 = vpop.f32.mrf.mxu0 }
 0x144   : > { %v1075_v15 = vadd.f32 %v1071_v33, %v1045_v4  ;;  %3140 = vmatmul.msk.f32.vlgmr.msra.gmra.mxu2 %vm504_vm1, %v3541_v32  ;;  %3138 = vmatmul.msk.f32.gmra.mxu1 %vm504_vm1, %v3485_v22 }
 0x145   : > { %3169 = vmatpush.msk.msra.mxu2 %vm511_vm0, %v3168_v11 }
 0x146   : > { %v1104_v3 = vadd.f32 %v1100_v54, %v1075_v15  ;;  %3160 = vmatmul.msk.f32.gmra.mxu3 %vm504_vm1, %v3455_v16  ;;  %3162 = vmatmul.msk.f32.vlgmr.msra.gmra.mxu0 %vm504_vm1, %v3511_v26 }
 0x147   : > { %v1135_v55 = vpop.f32.mrf.mxu2  ;;  %3191 = vmatpush.msk.msra.mxu0 %vm511_vm0, %v3736_v0  ;;  %v3187_v0 = vld [vmem:[%s3364_s17 + $0x1c] sm:$0x7]  ;;  %s496_s17 = scalar_lea.vmem %s4036_s7, %s3227_s8 }
 0x148   : > { %v3908_v21 = vadd.f32 %v1104_v3, %v3840_v17  ;;  %v1108_v25 = vmul.f32 %v1104_v3, %v1104_v3  ;;  %v1162_v27 = vadd.f32 %v1161_v44, %v1135_v55  ;;  %3188 = vmatpush.msk.msrb.mxu3 %vm511_vm0, %v3187_v0 }
 0x149   : > { %v1218_v29 = vpop.f32.mrf.mxu1  ;;  %v1280_v30 = vpop.f32.mrf.mxu3 }
 0x14a   : > { %v3910_v33 = vadd.f32 %v1108_v25, %v839_v18  ;;  %v1194_v34 = vadd.f32 %v1188_v48, %v1162_v27  ;;  %v2422_v48 = vpop.permute.xlu2 %2421 }
 0x14b   : > { %v1310_v35 = vpop.f32.mrf.mxu0 }
 0x14c   : > { %3141 = vmatmul.msk.f32.gmra.mxu2 %vm504_vm1, %v3574_v39  ;;  %v1224_v37 = vadd.f32 %v1218_v29, %v1194_v34  ;;  %3151 = vmatmul.msk.f32.vlgmr.msrb.gmra.mxu1 %vm504_vm1, %v3516_v28  ;;  %v2602_v34 = vpop.permute.xlu1 %2601 }
 0x14d   : > { %3180 = vmatpush.msk.msrb.mxu1 %vm511_vm0, %v3179_v40 }
 0x14e   : > { %3163 = vmatmul.msk.f32.gmra.mxu0 %vm504_vm1, %v3536_v31  ;;  %3173 = vmatmul.msk.f32.vlgmr.msra.gmra.mxu3 %vm504_vm1, %v3541_v32 }
 0x14f   : > { %v1138_v17 = vpop.f32.mrf.mxu2  ;;  %3202 = vmatpush.msk.msra.mxu3 %vm511_vm0, %v3201_v58 }
 0x150   : > { %v1165_v42 = vadd.f32 %v1164_v57, %v1138_v17  ;;  %v3212_v17 = vld [vmem:[%s3431_s12 + $0x1c] sm:$0x7] }
 0x151   : > { %v1221_v44 = vpop.f32.mrf.mxu1  ;;  %v1404_v46 = vpop.f32.mrf.mxu3 }
 0x152   : > { %v1195_v47 = vadd.f32 %v1191_v60, %v1165_v42 }
 0x153   : > { %v1430_v49 = vpop.f32.mrf.mxu0 }
 0x154   : > { %3156 = vmatmul.msk.f32.vlgmr.msrb.gmra.mxu2 %vm504_vm1, %v3384_v5  ;;  %v1225_v50 = vadd.f32 %v1221_v44, %v1195_v47  ;;  %3152 = vmatmul.msk.f32.gmra.mxu1 %vm504_vm1, %v3548_v36  ;;  %v1431_v51 = vadd.f32 %v1430_v49, %v1404_v46 }
 0x155   : > { %3183 = vmatpush.msk.msrb.mxu2 %vm511_vm0, %v2422_v48 }
 0x156   : > { %3174 = vmatmul.msk.f32.gmra.mxu3 %vm504_vm1, %v3574_v39  ;;  %3177 = vmatmul.msk.f32.vlgmr.msrb.gmra.mxu0 %vm504_vm1, %v3569_v38 }
 0x157   : > { %v1248_v52 = vpop.f32.mrf.mxu2  ;;  %3205 = vmatpush.msk.msrb.mxu0 %vm511_vm0, %v2602_v34 }
 0x158   : > { %v1254_v53 = vadd.f32 %v1248_v52, %v1224_v37 }
 0x159   : > { %v1337_v56 = vpop.f32.mrf.mxu1  ;;  %v1407_v57 = vpop.f32.mrf.mxu3 }
 0x15a   : > { %v1283_v59 = vadd.f32 %v1277_v8, %v1254_v53 }
 0x15b   : > { %v1433_v60 = vpop.f32.mrf.mxu0 }
 0x15c   : > { %v1313_v62 = vadd.f32 %v1307_v12, %v1283_v59  ;;  %3157 = vmatmul.msk.f32.gmra.mxu2 %vm504_vm1, %v3436_v13  ;;  %3166 = vmatmul.msk.f32.vlgmr.msra.gmra.mxu1 %vm504_vm1, %v3441_v14  ;;  %v1434_v63 = vadd.f32 %v1433_v60, %v1407_v57 }
 0x15d   : > { %3194 = vmatpush.msk.msra.mxu1 %vm511_vm0, %v2513_v61 }
 0x15e   : > { %v1343_v2 = vadd.f32 %v1337_v56, %v1313_v62  ;;  %3178 = vmatmul.msk.f32.gmra.mxu0 %vm504_vm1, %v3595_v43  ;;  %3189 = vmatmul.msk.f32.vlgmr.msrb.gmra.mxu3 %vm504_vm1, %v3384_v5 }
 0x15f   : > { %v1251_v6 = vpop.f32.mrf.mxu2 }
 0x160   : > { %v1255_v7 = vadd.f32 %v1251_v6, %v1225_v50 }
 0x161   : > { %v1340_v54 = vpop.f32.mrf.mxu1  ;;  %v1517_v8 = vpop.f32.mrf.mxu3 }
 0x162   : > { %v1284_v4 = vadd.f32 %v1280_v30, %v1255_v7  ;;  %v2691_v30 = vpop.permute.xlu2 %2690 }
 0x163   : > { %v1546_v11 = vpop.f32.mrf.mxu0  ;;  %3216 = vmatpush.msk.msrb.mxu3 %vm511_vm0, %v2691_v30 }
 0x164   : > { %v1314_v12 = vadd.f32 %v1310_v35, %v1284_v4  ;;  %3170 = vmatmul.msk.f32.vlgmr.msra.gmra.mxu2 %vm504_vm1, %v3471_v20  ;;  %3167 = vmatmul.msk.f32.gmra.mxu1 %vm504_vm1, %v3466_v19 }
 0x165   : > { %3198 = vmatpush.msk.msra.mxu2 %vm511_vm0, %v3767_v10 }
 0x166   : > { %v1344_v15 = vadd.f32 %v1340_v54, %v1314_v12  ;;  %3190 = vmatmul.msk.f32.gmra.mxu3 %vm504_vm1, %v3436_v13  ;;  %3192 = vmatmul.msk.f32.vlgmr.msra.gmra.mxu0 %vm504_vm1, %v3369_v1 }
 0x167   : > { %v1366_v5 = vpop.f32.mrf.mxu2 }
 0x168   : > { %v1372_v3 = vadd.f32 %v1366_v5, %v1343_v2 }
 0x169   : > { %v1457_v55 = vpop.f32.mrf.mxu1  ;;  %v1520_v18 = vpop.f32.mrf.mxu3 }
 0x16a   : > { %v1374_v25 = vadd.f32 %v1372_v3, %v3889_v41  ;;  %v1376_v27 = vmul.f32 %v1372_v3, %v1372_v3  ;;  %v1463_v29 = vadd.f32 %v1457_v55, %v1431_v51 }
 0x16b   : > { %v1549_v35 = vpop.f32.mrf.mxu0 }
 0x16c   : > { %v1378_v13 = vadd.f32 %v1376_v27, %v3891_v9  ;;  %3171 = vmatmul.msk.f32.gmra.mxu2 %vm504_vm1, %v3485_v22  ;;  %3181 = vmatmul.msk.f32.vlgmr.msrb.gmra.mxu1 %vm504_vm1, %v3490_v23 }
 0x16d   : > { %3209 = vmatpush.msk.msrb.mxu1 %vm511_vm0, %v3810_v45 }
 0x16e   : > { %3193 = vmatmul.msk.f32.gmra.mxu0 %vm504_vm1, %v3455_v16  ;;  %3203 = vmatmul.msk.f32.vlgmr.msra.gmra.mxu3 %vm504_vm1, %v3471_v20 }
 0x16f   : > { %v1369_v1 = vpop.f32.mrf.mxu2 }
 0x170   : > { %v1373_v10 = vadd.f32 %v1369_v1, %v1344_v15 }
 0x171   : > { %v1460_v41 = vpop.f32.mrf.mxu1  ;;  %v1635_v37 = vpop.f32.mrf.mxu3 }
 0x172   : > { %v1375_v9 = vadd.f32 %v1373_v10, %v3908_v21  ;;  %v1377_v0 = vmul.f32 %v1373_v10, %v1373_v10  ;;  %v1464_v40 = vadd.f32 %v1460_v41, %v1434_v63 }
 0x173   : > { %v1673_v42 = vpop.f32.mrf.mxu0 }
 0x174   : > { %v1379_v44 = vadd.f32 %v1377_v0, %v3910_v33  ;;  %3184 = vmatmul.msk.f32.vlgmr.msrb.gmra.mxu2 %vm504_vm1, %v3516_v28  ;;  %3182 = vmatmul.msk.f32.gmra.mxu1 %vm504_vm1, %v3499_v24 }
 0x175   : > { %3213 = vmatpush.msk.msrb.mxu2 %vm511_vm0, %v3212_v17 }
 0x176   : > { %3204 = vmatmul.msk.f32.gmra.mxu3 %vm504_vm1, %v3485_v22  ;;  %3206 = vmatmul.msk.f32.vlgmr.msrb.gmra.mxu0 %vm504_vm1, %v3541_v32 }
 0x177   : > { %v1487_v16 = vpop.f32.mrf.mxu2 }
 0x178   : > { %v1493_v20 = vadd.f32 %v1487_v16, %v1463_v29 }
 0x179   : > { %v1576_v45 = vpop.f32.mrf.mxu1  ;;  %v1638_v21 = vpop.f32.mrf.mxu3 }
 0x17a   : > { %v1523_v46 = vadd.f32 %v1517_v8, %v1493_v20 }
 0x17b   : > { %v1676_v33 = vpop.f32.mrf.mxu0 }
 0x17c   : > { %v1552_v47 = vadd.f32 %v1546_v11, %v1523_v46  ;;  %3185 = vmatmul.msk.f32.gmra.mxu2 %vm504_vm1, %v3548_v36  ;;  %3195 = vmatmul.msk.f32.vlgmr.msra.gmra.mxu1 %vm504_vm1, %v3511_v26 }
 0x17e   : > { %v1582_v48 = vadd.f32 %v1576_v45, %v1552_v47  ;;  %3207 = vmatmul.msk.f32.gmra.mxu0 %vm504_vm1, %v3574_v39  ;;  %3217 = vmatmul.msk.f32.vlgmr.msrb.gmra.mxu3 %vm504_vm1, %v3516_v28 }
 0x17f   : > { %v1490_v22 = vpop.f32.mrf.mxu2 }
 0x180   : > { %v1494_v32 = vadd.f32 %v1490_v22, %v1464_v40 }
 0x181   : > { %v1579_v49 = vpop.f32.mrf.mxu1  ;;  %v1756_v50 = vpop.f32.mrf.mxu3 }
 0x182   : > { %v1524_v51 = vadd.f32 %v1520_v18, %v1494_v32 }
 0x183   : > { %v1786_v52 = vpop.f32.mrf.mxu0 }
 0x184   : > { %v1553_v53 = vadd.f32 %v1549_v35, %v1524_v51  ;;  %3199 = vmatmul.msk.f32.vlgmr.msra.gmra.mxu2 %vm504_vm1, %v3441_v14  ;;  %3196 = vmatmul.msk.f32.gmra.mxu1 %vm504_vm1, %v3536_v31 }
 0x186   : > { %v1583_v26 = vadd.f32 %v1579_v49, %v1553_v53  ;;  %3218 = vmatmul.msk.f32.gmra.mxu3 %vm504_vm1, %v3548_v36 }
 0x187   : > { %v1606_v39 = vpop.f32.mrf.mxu2 }
 0x188   : > { %v1612_v56 = vadd.f32 %v1606_v39, %v1582_v48 }
 0x189   : > { %v1699_v28 = vpop.f32.mrf.mxu1  ;;  %v1759_v57 = vpop.f32.mrf.mxu3 }
 0x18a   : > { %v1641_v59 = vadd.f32 %v1635_v37, %v1612_v56  ;;  %v1700_v58 = vadd.f32 %v1699_v28, %v1673_v42 }
 0x18b   : > { %v1789_v14 = vpop.f32.mrf.mxu0 }
 0x18c   : > { %v1643_v60 = vadd.f32 %v1641_v59, %v1374_v25  ;;  %v1645_v61 = vmul.f32 %v1641_v59, %v1641_v59  ;;  %3200 = vmatmul.msk.f32.gmra.mxu2 %vm504_vm1, %v3466_v19  ;;  %3210 = vmatmul.msk.f32.vlgmr.msrb.gmra.mxu1 %vm504_vm1, %v3569_v38 }
 0x18e   : > { %v1647_v31 = vadd.f32 %v1645_v61, %v1378_v13 }
 0x18f   : > { %v1609_v62 = vpop.f32.mrf.mxu2 }
 0x190   : > { %v1613_v63 = vadd.f32 %v1609_v62, %v1583_v26 }
 0x191   : > { %v1702_v2 = vpop.f32.mrf.mxu1  ;;  %v1875_v36 = vpop.f32.mrf.mxu3 }
 0x192   : > { %v1642_v6 = vadd.f32 %v1638_v21, %v1613_v63  ;;  %v1703_v7 = vadd.f32 %v1702_v2, %v1676_v33 }
 0x193   : > { %v1904_v4 = vpop.f32.mrf.mxu0 }
 0x194   : > { %v1644_v54 = vadd.f32 %v1642_v6, %v1375_v9  ;;  %v1646_v8 = vmul.f32 %v1642_v6, %v1642_v6  ;;  %3214 = vmatmul.msk.f32.vlgmr.msrb.gmra.mxu2 %vm504_vm1, %v3490_v23  ;;  %3211 = vmatmul.msk.f32.gmra.mxu1 %vm504_vm1, %v3595_v43 }
 0x196   : > { %v1648_v19 = vadd.f32 %v1646_v8, %v1379_v44 }
 0x197   : > { %v1726_v11 = vpop.f32.mrf.mxu2 }
 0x198   : > { %v1732_v38 = vadd.f32 %v1726_v11, %v1700_v58 }
 0x199   : > { %v1815_v12 = vpop.f32.mrf.mxu1  ;;  %v1878_v15 = vpop.f32.mrf.mxu3 }
 0x19a   : > { %v1762_v5 = vadd.f32 %v1756_v50, %v1732_v38 }
 0x19b   : > { %v1907_v27 = vpop.f32.mrf.mxu0 }
 0x19c   : > { %v1792_v3 = vadd.f32 %v1786_v52, %v1762_v5  ;;  %3215 = vmatmul.msk.f32.gmra.mxu2 %vm504_vm1, %v3499_v24 }
 0x19e   : > { %v1821_v55 = vadd.f32 %v1815_v12, %v1792_v3 }
 0x19f   : > { %v1729_v18 = vpop.f32.mrf.mxu2 }
 0x1a0   : > { %v1733_v25 = vadd.f32 %v1729_v18, %v1703_v7 }
 0x1a1   : > { %v1818_v29 = vpop.f32.mrf.mxu1  ;;  %v1995_v23 = vpop.f32.mrf.mxu3 }
 0x1a2   : > { %v1763_v30 = vadd.f32 %v1759_v57, %v1733_v25 }
 0x1a3   : > { %v2025_v37 = vpop.f32.mrf.mxu0 }
 0x1a4   : > { %v1793_v34 = vadd.f32 %v1789_v14, %v1763_v30 }
 0x1a6   : > { %v1822_v43 = vadd.f32 %v1818_v29, %v1793_v34 }
 0x1a7   : > { %v1845_v35 = vpop.f32.mrf.mxu2 }
 0x1a8   : > { %v1851_v13 = vadd.f32 %v1845_v35, %v1821_v55 }
 0x1a9   : > { %v1942_v1 = vpop.f32.mrf.mxu1  ;;  %v1998_v10 = vpop.f32.mrf.mxu3 }
 0x1aa   : > { %v1881_v41 = vadd.f32 %v1875_v36, %v1851_v13 }
 0x1ab   : > { %v2028_v21 = vpop.f32.mrf.mxu0 }
 0x1ac   : > { %v1910_v9 = vadd.f32 %v1904_v4, %v1881_v41 }
 0x1ae   : > { %v1912_v0 = vadd.f32 %v1910_v9, %v1643_v60  ;;  %v1914_v40 = vmul.f32 %v1910_v9, %v1910_v9 }
 0x1af   : > { %v1848_v17 = vpop.f32.mrf.mxu2 }
 0x1b0   : > { %v1916_v24 = vadd.f32 %v1914_v40, %v1647_v31  ;;  %v1852_v42 = vadd.f32 %v1848_v17, %v1822_v43 }
 0x1b1   : > { %v1945_v44 = vpop.f32.mrf.mxu1  ;;  %v2114_v20 = vpop.f32.mrf.mxu3 }
 0x1b2   : > { %v1882_v16 = vadd.f32 %v1878_v15, %v1852_v42 }
 0x1b3   : > { %v2144_v26 = vpop.f32.mrf.mxu0 }
 0x1b4   : > { %v1911_v45 = vadd.f32 %v1907_v27, %v1882_v16 }
 0x1b6   : > { %v1913_v46 = vadd.f32 %v1911_v45, %v1644_v54  ;;  %v1915_v33 = vmul.f32 %v1911_v45, %v1911_v45 }
 0x1b7   : > { %v1968_v47 = vpop.f32.mrf.mxu2 }
 0x1b8   : > { %v1917_v48 = vadd.f32 %v1915_v33, %v1648_v19  ;;  %v1969_v22 = vadd.f32 %v1968_v47, %v1942_v1 }
 0x1b9   : > { %v2055_v32 = vpop.f32.mrf.mxu1  ;;  %v2117_v51 = vpop.f32.mrf.mxu3 }
 0x1ba   : > { %v2001_v49 = vadd.f32 %v1995_v23, %v1969_v22 }
 0x1bb   : > { %v2147_v31 = vpop.f32.mrf.mxu0 }
 0x1bc   : > { %v2031_v50 = vadd.f32 %v2025_v37, %v2001_v49 }
 0x1be   : > { %v2061_v52 = vadd.f32 %v2055_v32, %v2031_v50 }
 0x1bf   : > { %v1971_v53 = vpop.f32.mrf.mxu2 }
 0x1c0   : > { %v1972_v39 = vadd.f32 %v1971_v53, %v1945_v44 }
 0x1c1   : > { %v2058_v56 = vpop.f32.mrf.mxu1  ;;  %v2237_v60 = vpop.f32.mrf.mxu3 }
 0x1c2   : > { %v2002_v28 = vadd.f32 %v1998_v10, %v1972_v39 }
 0x1c3   : > { %v2264_v38 = vpop.f32.mrf.mxu0 }
 0x1c4   : > { %v2032_v57 = vadd.f32 %v2028_v21, %v2002_v28 }
 0x1c6   : > { %v2062_v59 = vadd.f32 %v2058_v56, %v2032_v57 }
 0x1c7   : > { %v2084_v58 = vpop.f32.mrf.mxu2 }
 0x1c8   : > { %v2090_v61 = vadd.f32 %v2084_v58, %v2061_v52 }
 0x1c9   : > { %v2173_v14 = vpop.f32.mrf.mxu1  ;;  %v2240_v19 = vpop.f32.mrf.mxu3 }
 0x1ca   : > { %v2120_v62 = vadd.f32 %v2114_v20, %v2090_v61 }
 0x1cb   : > { %v2267_v29 = vpop.f32.mrf.mxu0 }
 0x1cc   : > { %v2150_v63 = vadd.f32 %v2144_v26, %v2120_v62 }
 0x1ce   : > { %v2179_v2 = vadd.f32 %v2173_v14, %v2150_v63 }
 0x1cf   : > { %v2087_v36 = vpop.f32.mrf.mxu2 }
 0x1d0   : > { %v4004_v6 = vadd.f32 %v2179_v2, %v1912_v0  ;;  %v2183_v7 = vmul.f32 %v2179_v2, %v2179_v2  ;;  %v2091_v54 = vadd.f32 %v2087_v36, %v2062_v59 }
 0x1d1   : > { %v2176_v8 = vpop.f32.mrf.mxu1  ;;  %v2353_v25 = vpop.f32.mrf.mxu3 }
 0x1d2   : > { %v4006_v4 = vadd.f32 %v2183_v7, %v1916_v24  ;;  %v2121_v11 = vadd.f32 %v2117_v51, %v2091_v54 }
 0x1d3   : > { %v2383_v35 = vpop.f32.mrf.mxu0 }
 0x1d4   : > { %v2151_v12 = vadd.f32 %v2147_v31, %v2121_v11 }
 0x1d6   : > { %v2180_v15 = vadd.f32 %v2176_v8, %v2151_v12 }
 0x1d7   : > { %v2211_v5 = vpop.f32.mrf.mxu2 }
 0x1d8   : > { %v4008_v3 = vadd.f32 %v2180_v15, %v1913_v46  ;;  %v2184_v55 = vmul.f32 %v2180_v15, %v2180_v15  ;;  %v2238_v17 = vadd.f32 %v2237_v60, %v2211_v5 }
 0x1d9   : > { %v2294_v18 = vpop.f32.mrf.mxu1  ;;  %v2356_v34 = vpop.f32.mrf.mxu3 }
 0x1da   : > { %v4010_v27 = vadd.f32 %v2184_v55, %v1917_v48  ;;  %v2270_v44 = vadd.f32 %v2264_v38, %v2238_v17 }
 0x1db   : > { %v2386_v41 = vpop.f32.mrf.mxu0 }
 0x1dc   : > { %v2300_v20 = vadd.f32 %v2294_v18, %v2270_v44 }
 0x1df   : > { %v2214_v23 = vpop.f32.mrf.mxu2 }
 0x1e0   : > { %v2241_v45 = vadd.f32 %v2240_v19, %v2214_v23 }
 0x1e1   : > { %v2297_v30 = vpop.f32.mrf.mxu1  ;;  %v2480_v1 = vpop.f32.mrf.mxu3 }
 0x1e2   : > { %v2271_v48 = vadd.f32 %v2267_v29, %v2241_v45 }
 0x1e3   : > { %v2506_v40 = vpop.f32.mrf.mxu0 }
 0x1e4   : > { %v2507_v21 = vadd.f32 %v2506_v40, %v2480_v1  ;;  %v2301_v52 = vadd.f32 %v2297_v30, %v2271_v48 }
 0x1e7   : > { %v2324_v43 = vpop.f32.mrf.mxu2 }
 0x1e8   : > { %v2330_v33 = vadd.f32 %v2324_v43, %v2300_v20 }
 0x1e9   : > { %v2413_v13 = vpop.f32.mrf.mxu1  ;;  %v2483_v0 = vpop.f32.mrf.mxu3 }
 0x1ea   : > { %v2359_v49 = vadd.f32 %v2353_v25, %v2330_v33 }
 0x1eb   : > { %v2509_v46 = vpop.f32.mrf.mxu0 }
 0x1ec   : > { %v2510_v53 = vadd.f32 %v2509_v46, %v2483_v0  ;;  %v2389_v39 = vadd.f32 %v2383_v35, %v2359_v49 }
 0x1ee   : > { %v2419_v60 = vadd.f32 %v2413_v13, %v2389_v39 }
 0x1ef   : > { %v2327_v10 = vpop.f32.mrf.mxu2 }
 0x1f0   : > { %v2331_v56 = vadd.f32 %v2327_v10, %v2301_v52 }
 0x1f1   : > { %v2416_v37 = vpop.f32.mrf.mxu1  ;;  %v2593_v16 = vpop.f32.mrf.mxu3 }
 0x1f2   : > { %v2360_v61 = vadd.f32 %v2356_v34, %v2331_v56 }
 0x1f3   : > { %v2622_v26 = vpop.f32.mrf.mxu0 }
 0x1f4   : > { %v2390_v2 = vadd.f32 %v2386_v41, %v2360_v61 }
 0x1f6   : > { %v2420_v38 = vadd.f32 %v2416_v37, %v2390_v2 }
 0x1f7   : > { %v2442_v9 = vpop.f32.mrf.mxu2 }
 0x1f8   : > { %v2448_v62 = vadd.f32 %v2442_v9, %v2419_v60 }
 0x1f9   : > { %v2533_v24 = vpop.f32.mrf.mxu1  ;;  %v2596_v51 = vpop.f32.mrf.mxu3 }
 0x1fa   : > { %v2539_v22 = vadd.f32 %v2533_v24, %v2507_v21  ;;  %v2452_v19 = vmul.f32 %v2448_v62, %v2448_v62  ;;  %v2450_v12 = vadd.f32 %v2448_v62, %v4004_v6 }
 0x1fb   : > { %v2625_v54 = vpop.f32.mrf.mxu0 }
 0x1fc   : > { %v2454_v23 = vadd.f32 %v2452_v19, %v4006_v4 }
 0x1ff   : > { %v2445_v42 = vpop.f32.mrf.mxu2 }
 0x200   : > { %v2449_v18 = vadd.f32 %v2445_v42, %v2420_v38 }
 0x201   : > { %v2536_v32 = vpop.f32.mrf.mxu1  ;;  %v2711_v63 = vpop.f32.mrf.mxu3 }
 0x202   : > { %v2540_v59 = vadd.f32 %v2536_v32, %v2510_v53  ;;  %v2453_v1 = vmul.f32 %v2449_v18, %v2449_v18  ;;  %v2451_v6 = vadd.f32 %v2449_v18, %v4008_v3 }
 0x204   : > { %v2455_v40 = vadd.f32 %v2453_v1, %v4010_v27 }
 0x207   : > { %v2563_v47 = vpop.f32.mrf.mxu2 }
 0x208   : > { %v2569_v50 = vadd.f32 %v2563_v47, %v2539_v22 }
 0x209   : > { %v2652_v58 = vpop.f32.mrf.mxu1  ;;  %v2714_v13 = vpop.f32.mrf.mxu3 }
 0x20a   : > { %v2599_v28 = vadd.f32 %v2593_v16, %v2569_v50 }
 0x20c   : > { %v2628_v14 = vadd.f32 %v2622_v26, %v2599_v28 }
 0x20e   : > { %v2658_v36 = vadd.f32 %v2652_v58, %v2628_v14 }
 0x20f   : > { %v2566_v57 = vpop.f32.mrf.mxu2 }
 0x210   : > { %v2570_v31 = vadd.f32 %v2566_v57, %v2540_v59 }
 0x211   : > { %v2655_v55 = vpop.f32.mrf.mxu1 }
 0x212   : > { %v2600_v7 = vadd.f32 %v2596_v51, %v2570_v31 }
 0x214   : > { %v2629_v15 = vadd.f32 %v2625_v54, %v2600_v7 }
 0x216   : > { %v2659_v30 = vadd.f32 %v2655_v55, %v2629_v15 }
 0x217   : > { %v2682_v8 = vpop.f32.mrf.mxu2 }
 0x218   : > { %v2688_v11 = vadd.f32 %v2682_v8, %v2658_v36 }
 0x21a   : > { %v2717_v5 = vadd.f32 %v2711_v63, %v2688_v11 }
 0x21c   : > { %v2721_v25 = vmul.f32 %v2717_v5, %v2717_v5  ;;  %v2719_v29 = vadd.f32 %v2717_v5, %v2450_v12 }
 0x21e   : > { %v2726_v34 = vsel %vm2725_vm2, %v2719_v29, 0.0  ;;  %v2723_v43 = vadd.f32 %v2721_v25, %v2454_v23 }
 0x21f   : > { %v2685_v35 = vpop.f32.mrf.mxu2  ;;  %2727 = vadd.xlane.f32.xlu0 %v2726_v34 }
 0x220   : > { %v2689_v10 = vadd.f32 %v2685_v35, %v2659_v30  ;;  %v2737_v41 = vsel %vm2725_vm2, %v2723_v43, 0.0 }
 0x221   : > { %2738 = vadd.xlane.f32.xlu2 %v2737_v41 }
 0x222   : > { %v2718_v37 = vadd.f32 %v2714_v13, %v2689_v10 }
 0x224   : > { %v2722_v9 = vmul.f32 %v2718_v37, %v2718_v37  ;;  %v2720_v0 = vadd.f32 %v2718_v37, %v2451_v6 }
 0x226   : > { %v2730_v4 = vsel %vm2729_vm3, %v2720_v0, 0.0  ;;  %v2724_v17 = vadd.f32 %v2722_v9, %v2455_v40 }
 0x227   : > { %2731 = vadd.xlane.f32.xlu1 %v2730_v4 }
 0x228   : > { %v2740_v24 = vsel %vm2729_vm3, %v2724_v17, 0.0 }
 0x229   : > { %2741 = vadd.xlane.f32.xlu2 %v2740_v24 }
 0x292   : > { %v2728_v42 = vpop.xlane.xlu0 %2727 }
 0x293   : > { %2734 = vst.msk [vmem:[%s496_s17] sm:$0xff] %vm2733_vm4, %v2728_v42 }
 0x294   : > { %v2739_v3 = vpop.xlane.xlu2 %2738 }
 0x295   : > { %2744 = vst.msk [vmem:[%s496_s17] sm:$0xff] %vm2743_vm5, %v2739_v3 }
 0x29a   : > { %v2732_v44 = vpop.xlane.xlu1 %2731 }
 0x29b   : > { %2736 = vst.msk [vmem:[%s496_s17 + $0x8] sm:$0x1f] %vm2735_vm6, %v2732_v44 }
 0x29c   : > { %v2742_v27 = vpop.xlane.xlu2 %2741 }
 0x29d   : > { %2746 = vst.msk [vmem:[%s496_s17 + $0x8] sm:$0x1f] %vm2745_vm7, %v2742_v27 }
 0x29e PF: > { %s17_s26 = sadd.s32 1, %s3275_s26   ;;  %s4037_s24 = smov %s3271_s25 }
 0x29f   : > { %p14_p5 = scmp.ge.s32.totalorder %s17_s26, 4   ;;  %s4038_s25 = smov %s4040_s27 }
 0x2a1   :  { %16 = sbr.rel (!%p14_p5) target bundleno = 2 (0x2), region = 143 }

</bundles_post_ra>
